<compile_context>
chip_gen: v7x
topology: tpu7x:2x2x1
jax: 0.10.0
libtpu: 0.0.40
codegen_flags: <defaults>
</compile_context>

<pallas_src>
import functools

import jax
import jax.numpy as jnp
from jax.experimental import pallas as pl
from jax.experimental.pallas import tpu as pltpu

# ----------------------------- problem sizes (small, consistent with module) --
NODE_FEAT = 10          # node_feature_dim
HIDDEN = 32             # hidden_dim
LATENT = 16             # latent_dim
NUM_GRAPHS = 8          # num_graphs (full padded sequence length)
T = 6                   # observed graph list length (< NUM_GRAPHS)
N = 16                  # nodes per graph
CTX_DIM = LATENT + NUM_GRAPHS * HIDDEN   # decoder_fc input dim


# =============================================================================
# Fused kernel: encoder -> LSTM -> reparameterize -> decoder, one grid step.
# `mask` is a static Python tuple (same role as the Python list in PyTorch).
# =============================================================================
def fused_kernel(mask,
                 x_ref, a_ref, latlon_ref, eps_ref,
                 ewl_ref, ewr_ref, ebl_ref,
                 wih_ref, whh_ref, blstm_ref,
                 wmulv_ref, bmulv_ref,
                 wdec_ref, bdec_ref,
                 w12_ref, b2_ref,
                 recon_ref, mu_ref, lv_ref, reprs_ref):
    # ---- encoder: SAGEConv(F->H) + ReLU + mean pool, skip masked layers -----
    # PyG SAGEConv semantics: out = (A_mean @ x) @ W_l^T + b_l + x @ W_r^T
    a = a_ref[...]                                                   # (N, N)
    ewl = ewl_ref[...]
    ewr = ewr_ref[...]
    ebl = ebl_ref[...]
    rows = []
    for i in range(T):
        if mask[i]:
            x = x_ref[i]                                             # (N, F)
            agg = jnp.dot(a, x, preferred_element_type=jnp.float32)
            h = (jnp.dot(agg, ewl, preferred_element_type=jnp.float32)
                 + jnp.dot(x, ewr, preferred_element_type=jnp.float32)
                 + ebl)
            h = jnp.maximum(h, 0.0)                                  # ReLU
            rows.append(jnp.mean(h, axis=0, keepdims=True))          # (1, H)
        else:
            rows.append(jnp.zeros((1, HIDDEN), jnp.float32))
    node_reprs = jnp.concatenate(rows, axis=0)                       # (T, H)
    reprs_ref[...] = node_reprs                                      # one dense store

    # ---- LSTM (batch=1), input projection hoisted out of the recurrence -----
    # gates_x holds x_t @ W_ih^T + (b_ih + b_hh) for all timesteps at once.
    gates_x = (jnp.dot(node_reprs, wih_ref[...],
                       preferred_element_type=jnp.float32)
               + blstm_ref[...])                                     # (T, 4H)
    whh = whh_ref[...]
    h_t = jnp.zeros((1, HIDDEN), jnp.float32)
    c_t = jnp.zeros((1, HIDDEN), jnp.float32)
    for t in range(T):                                               # static unroll
        gates = gates_x[t:t + 1, :] + jnp.dot(
            h_t, whh, preferred_element_type=jnp.float32)            # (1, 4H)
        i_g = jax.nn.sigmoid(gates[:, 0 * HIDDEN:1 * HIDDEN])        # PyTorch order
        f_g = jax.nn.sigmoid(gates[:, 1 * HIDDEN:2 * HIDDEN])        # i, f, g, o
        g_g = jnp.tanh(gates[:, 2 * HIDDEN:3 * HIDDEN])
        o_g = jax.nn.sigmoid(gates[:, 3 * HIDDEN:4 * HIDDEN])
        c_t = f_g * c_t + i_g * g_g
        h_t = o_g * jnp.tanh(c_t)

    # ---- fc_mu / fc_logvar packed into one head matmul ----------------------
    mulv = (jnp.dot(h_t, wmulv_ref[...], preferred_element_type=jnp.float32)
            + bmulv_ref[...])                                        # (1, 2*LATENT)
    mu = mulv[:, :LATENT]
    logvar = mulv[:, LATENT:]
    mu_ref[...] = mu
    lv_ref[...] = logvar

    # ---- reparameterize ------------------------------------------------------
    z = mu + eps_ref[...] * jnp.exp(0.5 * logvar)                    # (1, LATENT)

    # ---- decoder_fc: z_context @ W split along K; zero (masked/pad) chunks
    #      are skipped, which is exactly equivalent to the concatenated matmul.
    dec = (jnp.dot(z, wdec_ref[0:LATENT, :],
                   preferred_element_type=jnp.float32)
           + bdec_ref[...])                                          # (1, H)
    for i in range(T):
        if mask[i]:
            start = LATENT + i * HIDDEN
            dec = dec + jnp.dot(rows[i], wdec_ref[start:start + HIDDEN, :],
                                preferred_element_type=jnp.float32)
    dec = jnp.maximum(dec, 0.0)                                      # ReLU

    # ---- decoder SAGEConv(H->1) on broadcast(dec) node features -------------
    # X = broadcast(dec)  =>  A_mean @ X == rowsum(A_mean) * dec  (exact, even
    # for isolated nodes whose adjacency row is all zeros).
    row_sum = jnp.sum(a, axis=1, keepdims=True)                      # (N, 1)
    tmp = jnp.dot(dec, w12_ref[...],
                  preferred_element_type=jnp.float32)                # (1, 2) = [dec@W_l | dec@W_r]
    out = row_sum * tmp[:, 0:1] + tmp[:, 1:2] + b2_ref[...]          # (N, 1)

    # ---- concat lat_lon and store recon_x -----------------------------------
    recon_ref[...] = jnp.concatenate([latlon_ref[...], out], axis=1)  # (N, 3)


def graph_mvae_forward(params, x_seq, a_norm, lat_lon, mask_bool, eps):
    mask = tuple(bool(m) for m in mask_bool)
    kernel = functools.partial(fused_kernel, mask)

    def full(shape):
        return pl.BlockSpec(shape, lambda i, _s=len(shape): (0,) * _s)

    recon_x, mu, logvar, node_reprs = pl.pallas_call(
        kernel,
        out_shape=(jax.ShapeDtypeStruct((N, 3), jnp.float32),
                   jax.ShapeDtypeStruct((1, LATENT), jnp.float32),
                   jax.ShapeDtypeStruct((1, LATENT), jnp.float32),
                   jax.ShapeDtypeStruct((T, HIDDEN), jnp.float32)),
        grid_spec=pltpu.PrefetchScalarGridSpec(
            num_scalar_prefetch=0,
            grid=(1,),
            in_specs=[
                full((T, N, NODE_FEAT)),      # x_seq
                full((N, N)),                 # a_norm
                full((N, 2)),                 # lat_lon
                full((1, LATENT)),            # eps
                full((NODE_FEAT, HIDDEN)),    # enc W_l^T
                full((NODE_FEAT, HIDDEN)),    # enc W_r^T
                full((1, HIDDEN)),            # enc b
                full((HIDDEN, 4 * HIDDEN)),   # LSTM W_ih^T
                full((HIDDEN, 4 * HIDDEN)),   # LSTM W_hh^T
                full((1, 4 * HIDDEN)),        # LSTM b_ih + b_hh
                full((HIDDEN, 2 * LATENT)),   # [fc_mu | fc_logvar] W^T
                full((1, 2 * LATENT)),        # [fc_mu | fc_logvar] b
                full((CTX_DIM, HIDDEN)),      # decoder_fc W^T
                full((1, HIDDEN)),            # decoder_fc b
                full((HIDDEN, 2)),            # [gnn2 W_l^T | gnn2 W_r^T]
                full((1, 1)),                 # gnn2 b
            ],
            out_specs=[
                full((N, 3)),
                full((1, LATENT)),
                full((1, LATENT)),
                full((T, HIDDEN)),
            ],
        ),
        compiler_params=pltpu.CompilerParams(
            dimension_semantics=("arbitrary",)),
    )(x_seq, a_norm, lat_lon, eps,
      params["enc_wl_t"], params["enc_wr_t"], params["enc_bl"],
      params["wih_t"], params["whh_t"], params["b_lstm"],
      params["wmulv_t"], params["bmulv"],
      params["dec_w_t"], params["dec_b"],
      params["gnn2_w12_t"], params["gnn2_b"])
    return recon_x, mu, logvar, node_reprs


def init_params(key):
    ks = jax.random.split(key, 12)
    s = 0.1
    # Linear weights are stored pre-transposed (in_dim, out_dim) so the kernel
    # does y = x @ W_t + b (== PyTorch x @ W.T + b).
    wmu_t = s * jax.random.normal(ks[6], (HIDDEN, LATENT), jnp.float32)
    wlv_t = s * jax.random.normal(ks[8], (HIDDEN, LATENT), jnp.float32)
    bmu = s * jax.random.normal(ks[7], (1, LATENT), jnp.float32)
    blv = s * jax.random.normal(ks[9], (1, LATENT), jnp.float32)
    gnn2_wl_t = s * jax.random.normal(ks[11], (HIDDEN, 1), jnp.float32)
    gnn2_wr_t = s * 0.5 * jnp.ones((HIDDEN, 1), jnp.float32)
    return {
        "enc_wl_t": s * jax.random.normal(ks[0], (NODE_FEAT, HIDDEN), jnp.float32),
        "enc_wr_t": s * jax.random.normal(ks[1], (NODE_FEAT, HIDDEN), jnp.float32),
        "enc_bl":   s * jax.random.normal(ks[2], (1, HIDDEN), jnp.float32),
        "wih_t":    s * jax.random.normal(ks[3], (HIDDEN, 4 * HIDDEN), jnp.float32),
        "whh_t":    s * jax.random.normal(ks[4], (HIDDEN, 4 * HIDDEN), jnp.float32),
        # b_ih + b_hh are only ever summed in the LSTM cell; store the sum.
        "b_lstm":   s * jax.random.normal(ks[5], (1, 4 * HIDDEN), jnp.float32),
        # fc_mu / fc_logvar packed side by side: one head matmul in the kernel.
        "wmulv_t":  jnp.concatenate([wmu_t, wlv_t], axis=1),          # (H, 2*LATENT)
        "bmulv":    jnp.concatenate([bmu, blv], axis=1),              # (1, 2*LATENT)
        "dec_w_t":  s * jax.random.normal(ks[10], (CTX_DIM, HIDDEN), jnp.float32),
        "dec_b":    jnp.zeros((1, HIDDEN), jnp.float32),
        # decoder_gnn W_l / W_r packed side by side: one (1,H)@(H,2) matmul.
        "gnn2_w12_t": jnp.concatenate([gnn2_wl_t, gnn2_wr_t], axis=1),  # (H, 2)
        "gnn2_b":   jnp.zeros((1, 1), jnp.float32),
    }


if __name__ == "__main__":
    key = jax.random.PRNGKey(0)
    k_param, k_x, k_eps = jax.random.split(key, 3)

    params = init_params(k_param)

    # Graph sequence: T complete graphs, N nodes each, ring topology (deg=2).
    x_seq = jax.random.normal(k_x, (T, N, NODE_FEAT), jnp.float32)
    src = jnp.concatenate([jnp.arange(N), (jnp.arange(N) + 1) % N])
    dst = jnp.concatenate([(jnp.arange(N) + 1) % N, jnp.arange(N)])
    adj = jnp.zeros((N, N), jnp.float32).at[dst, src].set(1.0)
    deg = jnp.clip(adj.sum(axis=1, keepdims=True), 1.0)
    a_norm = adj / deg                                      # mean-aggregation matrix
    lat_lon = x_seq[0, :, 0:2]                              # graph_list[0].x[:, 0:2]

    # Observed / masked layer pattern (True = observed), static like in PyTorch.
    mask_bool = [True, True, False, True, False, True]

    # eps ~ N(0, I)  (torch.randn_like in the reference; RNG stream differs).
    eps = jax.random.normal(k_eps, (1, LATENT), jnp.float32)

    recon_x, mu, logvar, node_reprs = graph_mvae_forward(
        params, x_seq, a_norm, lat_lon, mask_bool, eps)
    jax.block_until_ready((recon_x, mu, logvar, node_reprs))

    # Assemble the (layer_index, reconstructed_x) list exactly as decode() does:
    # every masked layer and every padded layer gets the same decoder output
    # (identical decoder input / adjacency / node count).
    reconstructed_layers = []
    for i in range(T):
        if not mask_bool[i]:
            reconstructed_layers.append((i, recon_x))
    for i in range(T, NUM_GRAPHS):
        reconstructed_layers.append((i, recon_x))

    assert recon_x.shape == (N, 3)
    assert mu.shape == (1, LATENT) and logvar.shape == (1, LATENT)
    assert node_reprs.shape == (T, HIDDEN)
    assert len(reconstructed_layers) == (NUM_GRAPHS - T) + sum(
        1 for m in mask_bool if not m)

    print("KERNEL_OK")
</pallas_src>

<mosaic_0001>
module attributes {stable_mosaic.version = 11 : i64} {
  func.func @fused_kernel(%arg0: i32, %arg1: memref<6x16x10xf32, #tpu.memory_space<vmem>>, %arg2: memref<16x16xf32, #tpu.memory_space<vmem>>, %arg3: memref<16x2xf32, #tpu.memory_space<vmem>>, %arg4: memref<1x16xf32, #tpu.memory_space<vmem>>, %arg5: memref<10x32xf32, #tpu.memory_space<vmem>>, %arg6: memref<10x32xf32, #tpu.memory_space<vmem>>, %arg7: memref<1x32xf32, #tpu.memory_space<vmem>>, %arg8: memref<32x128xf32, #tpu.memory_space<vmem>>, %arg9: memref<32x128xf32, #tpu.memory_space<vmem>>, %arg10: memref<1x128xf32, #tpu.memory_space<vmem>>, %arg11: memref<32x32xf32, #tpu.memory_space<vmem>>, %arg12: memref<1x32xf32, #tpu.memory_space<vmem>>, %arg13: memref<272x32xf32, #tpu.memory_space<vmem>>, %arg14: memref<1x32xf32, #tpu.memory_space<vmem>>, %arg15: memref<32x2xf32, #tpu.memory_space<vmem>>, %arg16: memref<1x1xf32, #tpu.memory_space<vmem>>, %arg17: memref<16x3xf32, #tpu.memory_space<vmem>>, %arg18: memref<1x16xf32, #tpu.memory_space<vmem>>, %arg19: memref<1x16xf32, #tpu.memory_space<vmem>>, %arg20: memref<6x32xf32, #tpu.memory_space<vmem>>) attributes {dimension_semantics = [#tpu.dimension_semantics<arbitrary>], iteration_bounds = array<i64: 1>, scalar_prefetch = 0 : i64, scratch_operands = 0 : i64, tpu.core_type = #tpu.core_type<tc>, window_params = [{pipeline_mode = #tpu.pipeline_mode<synchronous>, transform_indices = @transform_0, window_bounds = array<i64: 6, 16, 10>}, {pipeline_mode = #tpu.pipeline_mode<synchronous>, transform_indices = @transform_1, window_bounds = array<i64: 16, 16>}, {pipeline_mode = #tpu.pipeline_mode<synchronous>, transform_indices = @transform_2, window_bounds = array<i64: 16, 2>}, {pipeline_mode = #tpu.pipeline_mode<synchronous>, transform_indices = @transform_3, window_bounds = array<i64: 1, 16>}, {pipeline_mode = #tpu.pipeline_mode<synchronous>, transform_indices = @transform_4, window_bounds = array<i64: 10, 32>}, {pipeline_mode = #tpu.pipeline_mode<synchronous>, transform_indices = @transform_5, window_bounds = array<i64: 10, 32>}, {pipeline_mode = #tpu.pipeline_mode<synchronous>, transform_indices = @transform_6, window_bounds = array<i64: 1, 32>}, {pipeline_mode = #tpu.pipeline_mode<synchronous>, transform_indices = @transform_7, window_bounds = array<i64: 32, 128>}, {pipeline_mode = #tpu.pipeline_mode<synchronous>, transform_indices = @transform_8, window_bounds = array<i64: 32, 128>}, {pipeline_mode = #tpu.pipeline_mode<synchronous>, transform_indices = @transform_9, window_bounds = array<i64: 1, 128>}, {pipeline_mode = #tpu.pipeline_mode<synchronous>, transform_indices = @transform_10, window_bounds = array<i64: 32, 32>}, {pipeline_mode = #tpu.pipeline_mode<synchronous>, transform_indices = @transform_11, window_bounds = array<i64: 1, 32>}, {pipeline_mode = #tpu.pipeline_mode<synchronous>, transform_indices = @transform_12, window_bounds = array<i64: 272, 32>}, {pipeline_mode = #tpu.pipeline_mode<synchronous>, transform_indices = @transform_13, window_bounds = array<i64: 1, 32>}, {pipeline_mode = #tpu.pipeline_mode<synchronous>, transform_indices = @transform_14, window_bounds = array<i64: 32, 2>}, {pipeline_mode = #tpu.pipeline_mode<synchronous>, transform_indices = @transform_15, window_bounds = array<i64: 1, 1>}, {pipeline_mode = #tpu.pipeline_mode<synchronous>, transform_indices = @transform_16, window_bounds = array<i64: 16, 3>}, {pipeline_mode = #tpu.pipeline_mode<synchronous>, transform_indices = @transform_17, window_bounds = array<i64: 1, 16>}, {pipeline_mode = #tpu.pipeline_mode<synchronous>, transform_indices = @transform_18, window_bounds = array<i64: 1, 16>}, {pipeline_mode = #tpu.pipeline_mode<synchronous>, transform_indices = @transform_19, window_bounds = array<i64: 6, 32>}]} {
    %c0 = arith.constant 0 : index
    %c0_0 = arith.constant 0 : index
    %0 = vector.load %arg2[%c0, %c0_0] : memref<16x16xf32, #tpu.memory_space<vmem>>, vector<16x16xf32>
    %c0_1 = arith.constant 0 : index
    %c0_2 = arith.constant 0 : index
    %1 = vector.load %arg5[%c0_1, %c0_2] : memref<10x32xf32, #tpu.memory_space<vmem>>, vector<10x32xf32>
    %c0_3 = arith.constant 0 : index
    %c0_4 = arith.constant 0 : index
    %2 = vector.load %arg6[%c0_3, %c0_4] : memref<10x32xf32, #tpu.memory_space<vmem>>, vector<10x32xf32>
    %c0_5 = arith.constant 0 : index
    %c0_6 = arith.constant 0 : index
    %3 = vector.load %arg7[%c0_5, %c0_6] : memref<1x32xf32, #tpu.memory_space<vmem>>, vector<1x32xf32>
    %c0_7 = arith.constant 0 : index
    %c0_8 = arith.constant 0 : index
    %c0_9 = arith.constant 0 : index
    %4 = vector.load %arg1[%c0_7, %c0_8, %c0_9] : memref<6x16x10xf32, #tpu.memory_space<vmem>>, vector<1x16x10xf32>
    %5 = vector.shape_cast %4 : vector<1x16x10xf32> to vector<16x10xf32>
    %cst = arith.constant dense<0.000000e+00> : vector<16x10xf32>
    %6 = tpu.matmul %0, %5, %cst {dimension_numbers = #tpu.dot_dimension_numbers<[1], [0], [0], [1], [0, 0, 1, 1], [], []>} : vector<16x16xf32>, vector<16x10xf32>, vector<16x10xf32> -> vector<16x10xf32>
    %cst_10 = arith.constant dense<0.000000e+00> : vector<16x32xf32>
    %7 = tpu.matmul %6, %1, %cst_10 {dimension_numbers = #tpu.dot_dimension_numbers<[1], [0], [0], [1], [0, 0, 1, 1], [], []>} : vector<16x10xf32>, vector<10x32xf32>, vector<16x32xf32> -> vector<16x32xf32>
    %cst_11 = arith.constant dense<0.000000e+00> : vector<16x32xf32>
    %8 = tpu.matmul %5, %2, %cst_11 {dimension_numbers = #tpu.dot_dimension_numbers<[1], [0], [0], [1], [0, 0, 1, 1], [], []>} : vector<16x10xf32>, vector<10x32xf32>, vector<16x32xf32> -> vector<16x32xf32>
    %9 = arith.addf %7, %8 : vector<16x32xf32>
    %10 = vector.broadcast %3 : vector<1x32xf32> to vector<16x32xf32>
    %11 = arith.addf %9, %10 : vector<16x32xf32>
    %cst_12 = arith.constant 0.000000e+00 : f32
    %12 = vector.broadcast %cst_12 : f32 to vector<16x32xf32>
    %13 = arith.maximumf %11, %12 : vector<16x32xf32>
    %cst_13 = arith.constant dense<0.000000e+00> : vector<32xf32>
    %14 = vector.multi_reduction <add>, %13, %cst_13 [0] : vector<16x32xf32> to vector<32xf32>
    %15 = vector.shape_cast %14 : vector<32xf32> to vector<1x32xf32>
    %cst_14 = arith.constant 1.600000e+01 : f32
    %16 = vector.broadcast %cst_14 : f32 to vector<1x32xf32>
    %17 = arith.divf %15, %16 : vector<1x32xf32>
    %c1 = arith.constant 1 : index
    %c0_15 = arith.constant 0 : index
    %c0_16 = arith.constant 0 : index
    %18 = vector.load %arg1[%c1, %c0_15, %c0_16] : memref<6x16x10xf32, #tpu.memory_space<vmem>>, vector<1x16x10xf32>
    %19 = vector.shape_cast %18 : vector<1x16x10xf32> to vector<16x10xf32>
    %cst_17 = arith.constant dense<0.000000e+00> : vector<16x10xf32>
    %20 = tpu.matmul %0, %19, %cst_17 {dimension_numbers = #tpu.dot_dimension_numbers<[1], [0], [0], [1], [0, 0, 1, 1], [], []>} : vector<16x16xf32>, vector<16x10xf32>, vector<16x10xf32> -> vector<16x10xf32>
    %cst_18 = arith.constant dense<0.000000e+00> : vector<16x32xf32>
    %21 = tpu.matmul %20, %1, %cst_18 {dimension_numbers = #tpu.dot_dimension_numbers<[1], [0], [0], [1], [0, 0, 1, 1], [], []>} : vector<16x10xf32>, vector<10x32xf32>, vector<16x32xf32> -> vector<16x32xf32>
    %cst_19 = arith.constant dense<0.000000e+00> : vector<16x32xf32>
    %22 = tpu.matmul %19, %2, %cst_19 {dimension_numbers = #tpu.dot_dimension_numbers<[1], [0], [0], [1], [0, 0, 1, 1], [], []>} : vector<16x10xf32>, vector<10x32xf32>, vector<16x32xf32> -> vector<16x32xf32>
    %23 = arith.addf %21, %22 : vector<16x32xf32>
    %24 = vector.broadcast %3 : vector<1x32xf32> to vector<16x32xf32>
    %25 = arith.addf %23, %24 : vector<16x32xf32>
    %cst_20 = arith.constant 0.000000e+00 : f32
    %26 = vector.broadcast %cst_20 : f32 to vector<16x32xf32>
    %27 = arith.maximumf %25, %26 : vector<16x32xf32>
    %cst_21 = arith.constant dense<0.000000e+00> : vector<32xf32>
    %28 = vector.multi_reduction <add>, %27, %cst_21 [0] : vector<16x32xf32> to vector<32xf32>
    %29 = vector.shape_cast %28 : vector<32xf32> to vector<1x32xf32>
    %cst_22 = arith.constant 1.600000e+01 : f32
    %30 = vector.broadcast %cst_22 : f32 to vector<1x32xf32>
    %31 = arith.divf %29, %30 : vector<1x32xf32>
    %cst_23 = arith.constant 0.000000e+00 : f32
    %32 = vector.broadcast %cst_23 : f32 to vector<1x32xf32>
    %c3 = arith.constant 3 : index
    %c0_24 = arith.constant 0 : index
    %c0_25 = arith.constant 0 : index
    %33 = vector.load %arg1[%c3, %c0_24, %c0_25] : memref<6x16x10xf32, #tpu.memory_space<vmem>>, vector<1x16x10xf32>
    %34 = vector.shape_cast %33 : vector<1x16x10xf32> to vector<16x10xf32>
    %cst_26 = arith.constant dense<0.000000e+00> : vector<16x10xf32>
    %35 = tpu.matmul %0, %34, %cst_26 {dimension_numbers = #tpu.dot_dimension_numbers<[1], [0], [0], [1], [0, 0, 1, 1], [], []>} : vector<16x16xf32>, vector<16x10xf32>, vector<16x10xf32> -> vector<16x10xf32>
    %cst_27 = arith.constant dense<0.000000e+00> : vector<16x32xf32>
    %36 = tpu.matmul %35, %1, %cst_27 {dimension_numbers = #tpu.dot_dimension_numbers<[1], [0], [0], [1], [0, 0, 1, 1], [], []>} : vector<16x10xf32>, vector<10x32xf32>, vector<16x32xf32> -> vector<16x32xf32>
    %cst_28 = arith.constant dense<0.000000e+00> : vector<16x32xf32>
    %37 = tpu.matmul %34, %2, %cst_28 {dimension_numbers = #tpu.dot_dimension_numbers<[1], [0], [0], [1], [0, 0, 1, 1], [], []>} : vector<16x10xf32>, vector<10x32xf32>, vector<16x32xf32> -> vector<16x32xf32>
    %38 = arith.addf %36, %37 : vector<16x32xf32>
    %39 = vector.broadcast %3 : vector<1x32xf32> to vector<16x32xf32>
    %40 = arith.addf %38, %39 : vector<16x32xf32>
    %cst_29 = arith.constant 0.000000e+00 : f32
    %41 = vector.broadcast %cst_29 : f32 to vector<16x32xf32>
    %42 = arith.maximumf %40, %41 : vector<16x32xf32>
    %cst_30 = arith.constant dense<0.000000e+00> : vector<32xf32>
    %43 = vector.multi_reduction <add>, %42, %cst_30 [0] : vector<16x32xf32> to vector<32xf32>
    %44 = vector.shape_cast %43 : vector<32xf32> to vector<1x32xf32>
    %cst_31 = arith.constant 1.600000e+01 : f32
    %45 = vector.broadcast %cst_31 : f32 to vector<1x32xf32>
    %46 = arith.divf %44, %45 : vector<1x32xf32>
    %cst_32 = arith.constant 0.000000e+00 : f32
    %47 = vector.broadcast %cst_32 : f32 to vector<1x32xf32>
    %c5 = arith.constant 5 : index
    %c0_33 = arith.constant 0 : index
    %c0_34 = arith.constant 0 : index
    %48 = vector.load %arg1[%c5, %c0_33, %c0_34] : memref<6x16x10xf32, #tpu.memory_space<vmem>>, vector<1x16x10xf32>
    %49 = vector.shape_cast %48 : vector<1x16x10xf32> to vector<16x10xf32>
    %cst_35 = arith.constant dense<0.000000e+00> : vector<16x10xf32>
    %50 = tpu.matmul %0, %49, %cst_35 {dimension_numbers = #tpu.dot_dimension_numbers<[1], [0], [0], [1], [0, 0, 1, 1], [], []>} : vector<16x16xf32>, vector<16x10xf32>, vector<16x10xf32> -> vector<16x10xf32>
    %cst_36 = arith.constant dense<0.000000e+00> : vector<16x32xf32>
    %51 = tpu.matmul %50, %1, %cst_36 {dimension_numbers = #tpu.dot_dimension_numbers<[1], [0], [0], [1], [0, 0, 1, 1], [], []>} : vector<16x10xf32>, vector<10x32xf32>, vector<16x32xf32> -> vector<16x32xf32>
    %cst_37 = arith.constant dense<0.000000e+00> : vector<16x32xf32>
    %52 = tpu.matmul %49, %2, %cst_37 {dimension_numbers = #tpu.dot_dimension_numbers<[1], [0], [0], [1], [0, 0, 1, 1], [], []>} : vector<16x10xf32>, vector<10x32xf32>, vector<16x32xf32> -> vector<16x32xf32>
    %53 = arith.addf %51, %52 : vector<16x32xf32>
    %54 = vector.broadcast %3 : vector<1x32xf32> to vector<16x32xf32>
    %55 = arith.addf %53, %54 : vector<16x32xf32>
    %cst_38 = arith.constant 0.000000e+00 : f32
    %56 = vector.broadcast %cst_38 : f32 to vector<16x32xf32>
    %57 = arith.maximumf %55, %56 : vector<16x32xf32>
    %cst_39 = arith.constant dense<0.000000e+00> : vector<32xf32>
    %58 = vector.multi_reduction <add>, %57, %cst_39 [0] : vector<16x32xf32> to vector<32xf32>
    %59 = vector.shape_cast %58 : vector<32xf32> to vector<1x32xf32>
    %cst_40 = arith.constant 1.600000e+01 : f32
    %60 = vector.broadcast %cst_40 : f32 to vector<1x32xf32>
    %61 = arith.divf %59, %60 : vector<1x32xf32>
    %62 = tpu.concatenate %17, %31, %32, %46, %47, %61 in 0 : vector<1x32xf32>, vector<1x32xf32>, vector<1x32xf32>, vector<1x32xf32>, vector<1x32xf32>, vector<1x32xf32> -> vector<6x32xf32>
    %c0_41 = arith.constant 0 : index
    %c0_42 = arith.constant 0 : index
    %63 = vector.load %arg20[%c0_41, %c0_42] : memref<6x32xf32, #tpu.memory_space<vmem>>, vector<6x32xf32>
    tpu.vector_store %arg20[%c0_41, %c0_42], %62 {strides = array<i32>} : memref<6x32xf32, #tpu.memory_space<vmem>>, vector<6x32xf32>,
    %c0_43 = arith.constant 0 : index
    %c0_44 = arith.constant 0 : index
    %64 = vector.load %arg8[%c0_43, %c0_44] : memref<32x128xf32, #tpu.memory_space<vmem>>, vector<32x128xf32>
    %cst_45 = arith.constant dense<0.000000e+00> : vector<6x128xf32>
    %65 = tpu.matmul %62, %64, %cst_45 {dimension_numbers = #tpu.dot_dimension_numbers<[1], [0], [0], [1], [0, 0, 1, 1], [], []>} : vector<6x32xf32>, vector<32x128xf32>, vector<6x128xf32> -> vector<6x128xf32>
    %c0_46 = arith.constant 0 : index
    %c0_47 = arith.constant 0 : index
    %66 = vector.load %arg10[%c0_46, %c0_47] : memref<1x128xf32, #tpu.memory_space<vmem>>, vector<1x128xf32>
    %67 = vector.broadcast %66 : vector<1x128xf32> to vector<6x128xf32>
    %68 = arith.addf %65, %67 : vector<6x128xf32>
    %c0_48 = arith.constant 0 : index
    %c0_49 = arith.constant 0 : index
    %69 = vector.load %arg9[%c0_48, %c0_49] : memref<32x128xf32, #tpu.memory_space<vmem>>, vector<32x128xf32>
    %cst_50 = arith.constant 0.000000e+00 : f32
    %70 = vector.broadcast %cst_50 : f32 to vector<1x32xf32>
    %cst_51 = arith.constant 0.000000e+00 : f32
    %71 = vector.broadcast %cst_51 : f32 to vector<1x32xf32>
    %72 = vector.extract_strided_slice %68 {offsets = [0, 0], sizes = [1, 128], strides = [1, 1]} : vector<6x128xf32> to vector<1x128xf32>
    %cst_52 = arith.constant dense<0.000000e+00> : vector<1x128xf32>
    %73 = tpu.matmul %70, %69, %cst_52 {dimension_numbers = #tpu.dot_dimension_numbers<[1], [0], [0], [1], [0, 0, 1, 1], [], []>} : vector<1x32xf32>, vector<32x128xf32>, vector<1x128xf32> -> vector<1x128xf32>
    %74 = arith.addf %72, %73 : vector<1x128xf32>
    %75 = vector.extract_strided_slice %74 {offsets = [0, 0], sizes = [1, 32], strides = [1, 1]} : vector<1x128xf32> to vector<1x32xf32>
    %76 = arith.negf %75 : vector<1x32xf32>
    %77 = math.exp %76 : vector<1x32xf32>
    %cst_53 = arith.constant 1.000000e+00 : f32
    %78 = vector.broadcast %cst_53 : f32 to vector<1x32xf32>
    %79 = arith.addf %78, %77 : vector<1x32xf32>
    %80 = arith.divf %78, %79 : vector<1x32xf32>
    %81 = vector.extract_strided_slice %74 {offsets = [0, 32], sizes = [1, 32], strides = [1, 1]} : vector<1x128xf32> to vector<1x32xf32>
    %82 = arith.negf %81 : vector<1x32xf32>
    %83 = math.exp %82 : vector<1x32xf32>
    %cst_54 = arith.constant 1.000000e+00 : f32
    %84 = vector.broadcast %cst_54 : f32 to vector<1x32xf32>
    %85 = arith.addf %84, %83 : vector<1x32xf32>
    %86 = arith.divf %84, %85 : vector<1x32xf32>
    %87 = vector.extract_strided_slice %74 {offsets = [0, 64], sizes = [1, 32], strides = [1, 1]} : vector<1x128xf32> to vector<1x32xf32>
    %88 = math.tanh %87 : vector<1x32xf32>
    %89 = vector.extract_strided_slice %74 {offsets = [0, 96], sizes = [1, 32], strides = [1, 1]} : vector<1x128xf32> to vector<1x32xf32>
    %90 = arith.negf %89 : vector<1x32xf32>
    %91 = math.exp %90 : vector<1x32xf32>
    %cst_55 = arith.constant 1.000000e+00 : f32
    %92 = vector.broadcast %cst_55 : f32 to vector<1x32xf32>
    %93 = arith.addf %92, %91 : vector<1x32xf32>
    %94 = arith.divf %92, %93 : vector<1x32xf32>
    %95 = arith.mulf %86, %71 : vector<1x32xf32>
    %96 = arith.mulf %80, %88 : vector<1x32xf32>
    %97 = arith.addf %95, %96 : vector<1x32xf32>
    %98 = math.tanh %97 : vector<1x32xf32>
    %99 = arith.mulf %94, %98 : vector<1x32xf32>
    %100 = vector.extract_strided_slice %68 {offsets = [1, 0], sizes = [1, 128], strides = [1, 1]} : vector<6x128xf32> to vector<1x128xf32>
    %cst_56 = arith.constant dense<0.000000e+00> : vector<1x128xf32>
    %101 = tpu.matmul %99, %69, %cst_56 {dimension_numbers = #tpu.dot_dimension_numbers<[1], [0], [0], [1], [0, 0, 1, 1], [], []>} : vector<1x32xf32>, vector<32x128xf32>, vector<1x128xf32> -> vector<1x128xf32>
    %102 = arith.addf %100, %101 : vector<1x128xf32>
    %103 = vector.extract_strided_slice %102 {offsets = [0, 0], sizes = [1, 32], strides = [1, 1]} : vector<1x128xf32> to vector<1x32xf32>
    %104 = arith.negf %103 : vector<1x32xf32>
    %105 = math.exp %104 : vector<1x32xf32>
    %cst_57 = arith.constant 1.000000e+00 : f32
    %106 = vector.broadcast %cst_57 : f32 to vector<1x32xf32>
    %107 = arith.addf %106, %105 : vector<1x32xf32>
    %108 = arith.divf %106, %107 : vector<1x32xf32>
    %109 = vector.extract_strided_slice %102 {offsets = [0, 32], sizes = [1, 32], strides = [1, 1]} : vector<1x128xf32> to vector<1x32xf32>
    %110 = arith.negf %109 : vector<1x32xf32>
    %111 = math.exp %110 : vector<1x32xf32>
    %cst_58 = arith.constant 1.000000e+00 : f32
    %112 = vector.broadcast %cst_58 : f32 to vector<1x32xf32>
    %113 = arith.addf %112, %111 : vector<1x32xf32>
    %114 = arith.divf %112, %113 : vector<1x32xf32>
    %115 = vector.extract_strided_slice %102 {offsets = [0, 64], sizes = [1, 32], strides = [1, 1]} : vector<1x128xf32> to vector<1x32xf32>
    %116 = math.tanh %115 : vector<1x32xf32>
    %117 = vector.extract_strided_slice %102 {offsets = [0, 96], sizes = [1, 32], strides = [1, 1]} : vector<1x128xf32> to vector<1x32xf32>
    %118 = arith.negf %117 : vector<1x32xf32>
    %119 = math.exp %118 : vector<1x32xf32>
    %cst_59 = arith.constant 1.000000e+00 : f32
    %120 = vector.broadcast %cst_59 : f32 to vector<1x32xf32>
    %121 = arith.addf %120, %119 : vector<1x32xf32>
    %122 = arith.divf %120, %121 : vector<1x32xf32>
    %123 = arith.mulf %114, %97 : vector<1x32xf32>
    %124 = arith.mulf %108, %116 : vector<1x32xf32>
    %125 = arith.addf %123, %124 : vector<1x32xf32>
    %126 = math.tanh %125 : vector<1x32xf32>
    %127 = arith.mulf %122, %126 : vector<1x32xf32>
    %128 = vector.extract_strided_slice %68 {offsets = [2, 0], sizes = [1, 128], strides = [1, 1]} : vector<6x128xf32> to vector<1x128xf32>
    %cst_60 = arith.constant dense<0.000000e+00> : vector<1x128xf32>
    %129 = tpu.matmul %127, %69, %cst_60 {dimension_numbers = #tpu.dot_dimension_numbers<[1], [0], [0], [1], [0, 0, 1, 1], [], []>} : vector<1x32xf32>, vector<32x128xf32>, vector<1x128xf32> -> vector<1x128xf32>
    %130 = arith.addf %128, %129 : vector<1x128xf32>
    %131 = vector.extract_strided_slice %130 {offsets = [0, 0], sizes = [1, 32], strides = [1, 1]} : vector<1x128xf32> to vector<1x32xf32>
    %132 = arith.negf %131 : vector<1x32xf32>
    %133 = math.exp %132 : vector<1x32xf32>
    %cst_61 = arith.constant 1.000000e+00 : f32
    %134 = vector.broadcast %cst_61 : f32 to vector<1x32xf32>
    %135 = arith.addf %134, %133 : vector<1x32xf32>
    %136 = arith.divf %134, %135 : vector<1x32xf32>
    %137 = vector.extract_strided_slice %130 {offsets = [0, 32], sizes = [1, 32], strides = [1, 1]} : vector<1x128xf32> to vector<1x32xf32>
    %138 = arith.negf %137 : vector<1x32xf32>
    %139 = math.exp %138 : vector<1x32xf32>
    %cst_62 = arith.constant 1.000000e+00 : f32
    %140 = vector.broadcast %cst_62 : f32 to vector<1x32xf32>
    %141 = arith.addf %140, %139 : vector<1x32xf32>
    %142 = arith.divf %140, %141 : vector<1x32xf32>
    %143 = vector.extract_strided_slice %130 {offsets = [0, 64], sizes = [1, 32], strides = [1, 1]} : vector<1x128xf32> to vector<1x32xf32>
    %144 = math.tanh %143 : vector<1x32xf32>
    %145 = vector.extract_strided_slice %130 {offsets = [0, 96], sizes = [1, 32], strides = [1, 1]} : vector<1x128xf32> to vector<1x32xf32>
    %146 = arith.negf %145 : vector<1x32xf32>
    %147 = math.exp %146 : vector<1x32xf32>
    %cst_63 = arith.constant 1.000000e+00 : f32
    %148 = vector.broadcast %cst_63 : f32 to vector<1x32xf32>
    %149 = arith.addf %148, %147 : vector<1x32xf32>
    %150 = arith.divf %148, %149 : vector<1x32xf32>
    %151 = arith.mulf %142, %125 : vector<1x32xf32>
    %152 = arith.mulf %136, %144 : vector<1x32xf32>
    %153 = arith.addf %151, %152 : vector<1x32xf32>
    %154 = math.tanh %153 : vector<1x32xf32>
    %155 = arith.mulf %150, %154 : vector<1x32xf32>
    %156 = vector.extract_strided_slice %68 {offsets = [3, 0], sizes = [1, 128], strides = [1, 1]} : vector<6x128xf32> to vector<1x128xf32>
    %cst_64 = arith.constant dense<0.000000e+00> : vector<1x128xf32>
    %157 = tpu.matmul %155, %69, %cst_64 {dimension_numbers = #tpu.dot_dimension_numbers<[1], [0], [0], [1], [0, 0, 1, 1], [], []>} : vector<1x32xf32>, vector<32x128xf32>, vector<1x128xf32> -> vector<1x128xf32>
    %158 = arith.addf %156, %157 : vector<1x128xf32>
    %159 = vector.extract_strided_slice %158 {offsets = [0, 0], sizes = [1, 32], strides = [1, 1]} : vector<1x128xf32> to vector<1x32xf32>
    %160 = arith.negf %159 : vector<1x32xf32>
    %161 = math.exp %160 : vector<1x32xf32>
    %cst_65 = arith.constant 1.000000e+00 : f32
    %162 = vector.broadcast %cst_65 : f32 to vector<1x32xf32>
    %163 = arith.addf %162, %161 : vector<1x32xf32>
    %164 = arith.divf %162, %163 : vector<1x32xf32>
    %165 = vector.extract_strided_slice %158 {offsets = [0, 32], sizes = [1, 32], strides = [1, 1]} : vector<1x128xf32> to vector<1x32xf32>
    %166 = arith.negf %165 : vector<1x32xf32>
    %167 = math.exp %166 : vector<1x32xf32>
    %cst_66 = arith.constant 1.000000e+00 : f32
    %168 = vector.broadcast %cst_66 : f32 to vector<1x32xf32>
    %169 = arith.addf %168, %167 : vector<1x32xf32>
    %170 = arith.divf %168, %169 : vector<1x32xf32>
    %171 = vector.extract_strided_slice %158 {offsets = [0, 64], sizes = [1, 32], strides = [1, 1]} : vector<1x128xf32> to vector<1x32xf32>
    %172 = math.tanh %171 : vector<1x32xf32>
    %173 = vector.extract_strided_slice %158 {offsets = [0, 96], sizes = [1, 32], strides = [1, 1]} : vector<1x128xf32> to vector<1x32xf32>
    %174 = arith.negf %173 : vector<1x32xf32>
    %175 = math.exp %174 : vector<1x32xf32>
    %cst_67 = arith.constant 1.000000e+00 : f32
    %176 = vector.broadcast %cst_67 : f32 to vector<1x32xf32>
    %177 = arith.addf %176, %175 : vector<1x32xf32>
    %178 = arith.divf %176, %177 : vector<1x32xf32>
    %179 = arith.mulf %170, %153 : vector<1x32xf32>
    %180 = arith.mulf %164, %172 : vector<1x32xf32>
    %181 = arith.addf %179, %180 : vector<1x32xf32>
    %182 = math.tanh %181 : vector<1x32xf32>
    %183 = arith.mulf %178, %182 : vector<1x32xf32>
    %184 = vector.extract_strided_slice %68 {offsets = [4, 0], sizes = [1, 128], strides = [1, 1]} : vector<6x128xf32> to vector<1x128xf32>
    %cst_68 = arith.constant dense<0.000000e+00> : vector<1x128xf32>
    %185 = tpu.matmul %183, %69, %cst_68 {dimension_numbers = #tpu.dot_dimension_numbers<[1], [0], [0], [1], [0, 0, 1, 1], [], []>} : vector<1x32xf32>, vector<32x128xf32>, vector<1x128xf32> -> vector<1x128xf32>
    %186 = arith.addf %184, %185 : vector<1x128xf32>
    %187 = vector.extract_strided_slice %186 {offsets = [0, 0], sizes = [1, 32], strides = [1, 1]} : vector<1x128xf32> to vector<1x32xf32>
    %188 = arith.negf %187 : vector<1x32xf32>
    %189 = math.exp %188 : vector<1x32xf32>
    %cst_69 = arith.constant 1.000000e+00 : f32
    %190 = vector.broadcast %cst_69 : f32 to vector<1x32xf32>
    %191 = arith.addf %190, %189 : vector<1x32xf32>
    %192 = arith.divf %190, %191 : vector<1x32xf32>
    %193 = vector.extract_strided_slice %186 {offsets = [0, 32], sizes = [1, 32], strides = [1, 1]} : vector<1x128xf32> to vector<1x32xf32>
    %194 = arith.negf %193 : vector<1x32xf32>
    %195 = math.exp %194 : vector<1x32xf32>
    %cst_70 = arith.constant 1.000000e+00 : f32
    %196 = vector.broadcast %cst_70 : f32 to vector<1x32xf32>
    %197 = arith.addf %196, %195 : vector<1x32xf32>
    %198 = arith.divf %196, %197 : vector<1x32xf32>
    %199 = vector.extract_strided_slice %186 {offsets = [0, 64], sizes = [1, 32], strides = [1, 1]} : vector<1x128xf32> to vector<1x32xf32>
    %200 = math.tanh %199 : vector<1x32xf32>
    %201 = vector.extract_strided_slice %186 {offsets = [0, 96], sizes = [1, 32], strides = [1, 1]} : vector<1x128xf32> to vector<1x32xf32>
    %202 = arith.negf %201 : vector<1x32xf32>
    %203 = math.exp %202 : vector<1x32xf32>
    %cst_71 = arith.constant 1.000000e+00 : f32
    %204 = vector.broadcast %cst_71 : f32 to vector<1x32xf32>
    %205 = arith.addf %204, %203 : vector<1x32xf32>
    %206 = arith.divf %204, %205 : vector<1x32xf32>
    %207 = arith.mulf %198, %181 : vector<1x32xf32>
    %208 = arith.mulf %192, %200 : vector<1x32xf32>
    %209 = arith.addf %207, %208 : vector<1x32xf32>
    %210 = math.tanh %209 : vector<1x32xf32>
    %211 = arith.mulf %206, %210 : vector<1x32xf32>
    %212 = vector.extract_strided_slice %68 {offsets = [5, 0], sizes = [1, 128], strides = [1, 1]} : vector<6x128xf32> to vector<1x128xf32>
    %cst_72 = arith.constant dense<0.000000e+00> : vector<1x128xf32>
    %213 = tpu.matmul %211, %69, %cst_72 {dimension_numbers = #tpu.dot_dimension_numbers<[1], [0], [0], [1], [0, 0, 1, 1], [], []>} : vector<1x32xf32>, vector<32x128xf32>, vector<1x128xf32> -> vector<1x128xf32>
    %214 = arith.addf %212, %213 : vector<1x128xf32>
    %215 = vector.extract_strided_slice %214 {offsets = [0, 0], sizes = [1, 32], strides = [1, 1]} : vector<1x128xf32> to vector<1x32xf32>
    %216 = arith.negf %215 : vector<1x32xf32>
    %217 = math.exp %216 : vector<1x32xf32>
    %cst_73 = arith.constant 1.000000e+00 : f32
    %218 = vector.broadcast %cst_73 : f32 to vector<1x32xf32>
    %219 = arith.addf %218, %217 : vector<1x32xf32>
    %220 = arith.divf %218, %219 : vector<1x32xf32>
    %221 = vector.extract_strided_slice %214 {offsets = [0, 32], sizes = [1, 32], strides = [1, 1]} : vector<1x128xf32> to vector<1x32xf32>
    %222 = arith.negf %221 : vector<1x32xf32>
    %223 = math.exp %222 : vector<1x32xf32>
    %cst_74 = arith.constant 1.000000e+00 : f32
    %224 = vector.broadcast %cst_74 : f32 to vector<1x32xf32>
    %225 = arith.addf %224, %223 : vector<1x32xf32>
    %226 = arith.divf %224, %225 : vector<1x32xf32>
    %227 = vector.extract_strided_slice %214 {offsets = [0, 64], sizes = [1, 32], strides = [1, 1]} : vector<1x128xf32> to vector<1x32xf32>
    %228 = math.tanh %227 : vector<1x32xf32>
    %229 = vector.extract_strided_slice %214 {offsets = [0, 96], sizes = [1, 32], strides = [1, 1]} : vector<1x128xf32> to vector<1x32xf32>
    %230 = arith.negf %229 : vector<1x32xf32>
    %231 = math.exp %230 : vector<1x32xf32>
    %cst_75 = arith.constant 1.000000e+00 : f32
    %232 = vector.broadcast %cst_75 : f32 to vector<1x32xf32>
    %233 = arith.addf %232, %231 : vector<1x32xf32>
    %234 = arith.divf %232, %233 : vector<1x32xf32>
    %235 = arith.mulf %226, %209 : vector<1x32xf32>
    %236 = arith.mulf %220, %228 : vector<1x32xf32>
    %237 = arith.addf %235, %236 : vector<1x32xf32>
    %238 = math.tanh %237 : vector<1x32xf32>
    %239 = arith.mulf %234, %238 : vector<1x32xf32>
    %c0_76 = arith.constant 0 : index
    %c0_77 = arith.constant 0 : index
    %240 = vector.load %arg11[%c0_76, %c0_77] : memref<32x32xf32, #tpu.memory_space<vmem>>, vector<32x32xf32>
    %cst_78 = arith.constant dense<0.000000e+00> : vector<1x32xf32>
    %241 = tpu.matmul %239, %240, %cst_78 {dimension_numbers = #tpu.dot_dimension_numbers<[1], [0], [0], [1], [0, 0, 1, 1], [], []>} : vector<1x32xf32>, vector<32x32xf32>, vector<1x32xf32> -> vector<1x32xf32>
    %c0_79 = arith.constant 0 : index
    %c0_80 = arith.constant 0 : index
    %242 = vector.load %arg12[%c0_79, %c0_80] : memref<1x32xf32, #tpu.memory_space<vmem>>, vector<1x32xf32>
    %243 = arith.addf %241, %242 : vector<1x32xf32>
    %244 = vector.extract_strided_slice %243 {offsets = [0, 0], sizes = [1, 16], strides = [1, 1]} : vector<1x32xf32> to vector<1x16xf32>
    %245 = vector.extract_strided_slice %243 {offsets = [0, 16], sizes = [1, 16], strides = [1, 1]} : vector<1x32xf32> to vector<1x16xf32>
    %c0_81 = arith.constant 0 : index
    %c0_82 = arith.constant 0 : index
    %246 = vector.load %arg18[%c0_81, %c0_82] : memref<1x16xf32, #tpu.memory_space<vmem>>, vector<1x16xf32>
    tpu.vector_store %arg18[%c0_81, %c0_82], %244 {strides = array<i32>} : memref<1x16xf32, #tpu.memory_space<vmem>>, vector<1x16xf32>,
    %c0_83 = arith.constant 0 : index
    %c0_84 = arith.constant 0 : index
    %247 = vector.load %arg19[%c0_83, %c0_84] : memref<1x16xf32, #tpu.memory_space<vmem>>, vector<1x16xf32>
    tpu.vector_store %arg19[%c0_83, %c0_84], %245 {strides = array<i32>} : memref<1x16xf32, #tpu.memory_space<vmem>>, vector<1x16xf32>,
    %c0_85 = arith.constant 0 : index
    %c0_86 = arith.constant 0 : index
    %248 = vector.load %arg4[%c0_85, %c0_86] : memref<1x16xf32, #tpu.memory_space<vmem>>, vector<1x16xf32>
    %cst_87 = arith.constant 5.000000e-01 : f32
    %249 = vector.broadcast %cst_87 : f32 to vector<1x16xf32>
    %250 = arith.mulf %249, %245 : vector<1x16xf32>
    %251 = math.exp %250 : vector<1x16xf32>
    %252 = arith.mulf %248, %251 : vector<1x16xf32>
    %253 = arith.addf %244, %252 : vector<1x16xf32>
    %c0_88 = arith.constant 0 : index
    %c0_89 = arith.constant 0 : index
    %254 = vector.load %arg13[%c0_88, %c0_89] : memref<272x32xf32, #tpu.memory_space<vmem>>, vector<16x32xf32>
    %cst_90 = arith.constant dense<0.000000e+00> : vector<1x32xf32>
    %255 = tpu.matmul %253, %254, %cst_90 {dimension_numbers = #tpu.dot_dimension_numbers<[1], [0], [0], [1], [0, 0, 1, 1], [], []>} : vector<1x16xf32>, vector<16x32xf32>, vector<1x32xf32> -> vector<1x32xf32>
    %c0_91 = arith.constant 0 : index
    %c0_92 = arith.constant 0 : index
    %256 = vector.load %arg14[%c0_91, %c0_92] : memref<1x32xf32, #tpu.memory_space<vmem>>, vector<1x32xf32>
    %257 = arith.addf %255, %256 : vector<1x32xf32>
    %c16 = arith.constant 16 : index
    %c0_93 = arith.constant 0 : index
    %258 = vector.load %arg13[%c16, %c0_93] : memref<272x32xf32, #tpu.memory_space<vmem>>, vector<32x32xf32>
    %cst_94 = arith.constant dense<0.000000e+00> : vector<1x32xf32>
    %259 = tpu.matmul %17, %258, %cst_94 {dimension_numbers = #tpu.dot_dimension_numbers<[1], [0], [0], [1], [0, 0, 1, 1], [], []>} : vector<1x32xf32>, vector<32x32xf32>, vector<1x32xf32> -> vector<1x32xf32>
    %260 = arith.addf %257, %259 : vector<1x32xf32>
    %c48 = arith.constant 48 : index
    %c0_95 = arith.constant 0 : index
    %261 = vector.load %arg13[%c48, %c0_95] : memref<272x32xf32, #tpu.memory_space<vmem>>, vector<32x32xf32>
    %cst_96 = arith.constant dense<0.000000e+00> : vector<1x32xf32>
    %262 = tpu.matmul %31, %261, %cst_96 {dimension_numbers = #tpu.dot_dimension_numbers<[1], [0], [0], [1], [0, 0, 1, 1], [], []>} : vector<1x32xf32>, vector<32x32xf32>, vector<1x32xf32> -> vector<1x32xf32>
    %263 = arith.addf %260, %262 : vector<1x32xf32>
    %c112 = arith.constant 112 : index
    %c0_97 = arith.constant 0 : index
    %264 = vector.load %arg13[%c112, %c0_97] : memref<272x32xf32, #tpu.memory_space<vmem>>, vector<32x32xf32>
    %cst_98 = arith.constant dense<0.000000e+00> : vector<1x32xf32>
    %265 = tpu.matmul %46, %264, %cst_98 {dimension_numbers = #tpu.dot_dimension_numbers<[1], [0], [0], [1], [0, 0, 1, 1], [], []>} : vector<1x32xf32>, vector<32x32xf32>, vector<1x32xf32> -> vector<1x32xf32>
    %266 = arith.addf %263, %265 : vector<1x32xf32>
    %c176 = arith.constant 176 : index
    %c0_99 = arith.constant 0 : index
    %267 = vector.load %arg13[%c176, %c0_99] : memref<272x32xf32, #tpu.memory_space<vmem>>, vector<32x32xf32>
    %cst_100 = arith.constant dense<0.000000e+00> : vector<1x32xf32>
    %268 = tpu.matmul %61, %267, %cst_100 {dimension_numbers = #tpu.dot_dimension_numbers<[1], [0], [0], [1], [0, 0, 1, 1], [], []>} : vector<1x32xf32>, vector<32x32xf32>, vector<1x32xf32> -> vector<1x32xf32>
    %269 = arith.addf %266, %268 : vector<1x32xf32>
    %cst_101 = arith.constant 0.000000e+00 : f32
    %270 = vector.broadcast %cst_101 : f32 to vector<1x32xf32>
    %271 = arith.maximumf %269, %270 : vector<1x32xf32>
    %cst_102 = arith.constant dense<0.000000e+00> : vector<16xf32>
    %272 = vector.multi_reduction <add>, %0, %cst_102 [1] : vector<16x16xf32> to vector<16xf32>
    %273 = vector.shape_cast %272 : vector<16xf32> to vector<16x1xf32>
    %c0_103 = arith.constant 0 : index
    %c0_104 = arith.constant 0 : index
    %274 = vector.load %arg15[%c0_103, %c0_104] : memref<32x2xf32, #tpu.memory_space<vmem>>, vector<32x2xf32>
    %cst_105 = arith.constant dense<0.000000e+00> : vector<1x2xf32>
    %275 = tpu.matmul %271, %274, %cst_105 {dimension_numbers = #tpu.dot_dimension_numbers<[1], [0], [0], [1], [0, 0, 1, 1], [], []>} : vector<1x32xf32>, vector<32x2xf32>, vector<1x2xf32> -> vector<1x2xf32>
    %276 = vector.extract_strided_slice %275 {offsets = [0, 0], sizes = [1, 1], strides = [1, 1]} : vector<1x2xf32> to vector<1x1xf32>
    %277 = vector.broadcast %276 : vector<1x1xf32> to vector<16x1xf32>
    %278 = arith.mulf %273, %277 : vector<16x1xf32>
    %279 = vector.extract_strided_slice %275 {offsets = [0, 1], sizes = [1, 1], strides = [1, 1]} : vector<1x2xf32> to vector<1x1xf32>
    %280 = vector.broadcast %279 : vector<1x1xf32> to vector<16x1xf32>
    %281 = arith.addf %278, %280 : vector<16x1xf32>
    %c0_106 = arith.constant 0 : index
    %c0_107 = arith.constant 0 : index
    %282 = vector.load %arg16[%c0_106, %c0_107] : memref<1x1xf32, #tpu.memory_space<vmem>>, vector<1x1xf32>
    %283 = vector.broadcast %282 : vector<1x1xf32> to vector<16x1xf32>
    %284 = arith.addf %281, %283 : vector<16x1xf32>
    %c0_108 = arith.constant 0 : index
    %c0_109 = arith.constant 0 : index
    %285 = vector.load %arg3[%c0_108, %c0_109] : memref<16x2xf32, #tpu.memory_space<vmem>>, vector<16x2xf32>
    %286 = tpu.concatenate %285, %284 in 1 : vector<16x2xf32>, vector<16x1xf32> -> vector<16x3xf32>
    %c0_110 = arith.constant 0 : index
    %c0_111 = arith.constant 0 : index
    %287 = vector.load %arg17[%c0_110, %c0_111] : memref<16x3xf32, #tpu.memory_space<vmem>>, vector<16x3xf32>
    tpu.vector_store %arg17[%c0_110, %c0_111], %286 {strides = array<i32>} : memref<16x3xf32, #tpu.memory_space<vmem>>, vector<16x3xf32>,
    return
  }
  func.func @transform_0(%arg0: i32) -> (i32, i32, i32) {
    %c0_i32 = arith.constant 0 : i32
    %c0_i32_0 = arith.constant 0 : i32
    %c0_i32_1 = arith.constant 0 : i32
    %c0_i32_2 = arith.constant 0 : i32
    return %c0_i32, %c0_i32_0, %c0_i32_1 : i32, i32, i32
  }
  func.func @transform_1(%arg0: i32) -> (i32, i32) {
    %c0_i32 = arith.constant 0 : i32
    %c0_i32_0 = arith.constant 0 : i32
    %c0_i32_1 = arith.constant 0 : i32
    return %c0_i32, %c0_i32_0 : i32, i32
  }
  func.func @transform_2(%arg0: i32) -> (i32, i32) {
    %c0_i32 = arith.constant 0 : i32
    %c0_i32_0 = arith.constant 0 : i32
    %c0_i32_1 = arith.constant 0 : i32
    return %c0_i32, %c0_i32_0 : i32, i32
  }
  func.func @transform_3(%arg0: i32) -> (i32, i32) {
    %c0_i32 = arith.constant 0 : i32
    %c0_i32_0 = arith.constant 0 : i32
    %c0_i32_1 = arith.constant 0 : i32
    return %c0_i32, %c0_i32_0 : i32, i32
  }
  func.func @transform_4(%arg0: i32) -> (i32, i32) {
    %c0_i32 = arith.constant 0 : i32
    %c0_i32_0 = arith.constant 0 : i32
    %c0_i32_1 = arith.constant 0 : i32
    return %c0_i32, %c0_i32_0 : i32, i32
  }
  func.func @transform_5(%arg0: i32) -> (i32, i32) {
    %c0_i32 = arith.constant 0 : i32
    %c0_i32_0 = arith.constant 0 : i32
    %c0_i32_1 = arith.constant 0 : i32
    return %c0_i32, %c0_i32_0 : i32, i32
  }
  func.func @transform_6(%arg0: i32) -> (i32, i32) {
    %c0_i32 = arith.constant 0 : i32
    %c0_i32_0 = arith.constant 0 : i32
    %c0_i32_1 = arith.constant 0 : i32
    return %c0_i32, %c0_i32_0 : i32, i32
  }
  func.func @transform_7(%arg0: i32) -> (i32, i32) {
    %c0_i32 = arith.constant 0 : i32
    %c0_i32_0 = arith.constant 0 : i32
    %c0_i32_1 = arith.constant 0 : i32
    return %c0_i32, %c0_i32_0 : i32, i32
  }
  func.func @transform_8(%arg0: i32) -> (i32, i32) {
    %c0_i32 = arith.constant 0 : i32
    %c0_i32_0 = arith.constant 0 : i32
    %c0_i32_1 = arith.constant 0 : i32
    return %c0_i32, %c0_i32_0 : i32, i32
  }
  func.func @transform_9(%arg0: i32) -> (i32, i32) {
    %c0_i32 = arith.constant 0 : i32
    %c0_i32_0 = arith.constant 0 : i32
    %c0_i32_1 = arith.constant 0 : i32
    return %c0_i32, %c0_i32_0 : i32, i32
  }
  func.func @transform_10(%arg0: i32) -> (i32, i32) {
    %c0_i32 = arith.constant 0 : i32
    %c0_i32_0 = arith.constant 0 : i32
    %c0_i32_1 = arith.constant 0 : i32
    return %c0_i32, %c0_i32_0 : i32, i32
  }
  func.func @transform_11(%arg0: i32) -> (i32, i32) {
    %c0_i32 = arith.constant 0 : i32
    %c0_i32_0 = arith.constant 0 : i32
    %c0_i32_1 = arith.constant 0 : i32
    return %c0_i32, %c0_i32_0 : i32, i32
  }
  func.func @transform_12(%arg0: i32) -> (i32, i32) {
    %c0_i32 = arith.constant 0 : i32
    %c0_i32_0 = arith.constant 0 : i32
    %c0_i32_1 = arith.constant 0 : i32
    return %c0_i32, %c0_i32_0 : i32, i32
  }
  func.func @transform_13(%arg0: i32) -> (i32, i32) {
    %c0_i32 = arith.constant 0 : i32
    %c0_i32_0 = arith.constant 0 : i32
    %c0_i32_1 = arith.constant 0 : i32
    return %c0_i32, %c0_i32_0 : i32, i32
  }
  func.func @transform_14(%arg0: i32) -> (i32, i32) {
    %c0_i32 = arith.constant 0 : i32
    %c0_i32_0 = arith.constant 0 : i32
    %c0_i32_1 = arith.constant 0 : i32
    return %c0_i32, %c0_i32_0 : i32, i32
  }
  func.func @transform_15(%arg0: i32) -> (i32, i32) {
    %c0_i32 = arith.constant 0 : i32
    %c0_i32_0 = arith.constant 0 : i32
    %c0_i32_1 = arith.constant 0 : i32
    return %c0_i32, %c0_i32_0 : i32, i32
  }
  func.func @transform_16(%arg0: i32) -> (i32, i32) {
    %c0_i32 = arith.constant 0 : i32
    %c0_i32_0 = arith.constant 0 : i32
    %c0_i32_1 = arith.constant 0 : i32
    return %c0_i32, %c0_i32_0 : i32, i32
  }
  func.func @transform_17(%arg0: i32) -> (i32, i32) {
    %c0_i32 = arith.constant 0 : i32
    %c0_i32_0 = arith.constant 0 : i32
    %c0_i32_1 = arith.constant 0 : i32
    return %c0_i32, %c0_i32_0 : i32, i32
  }
  func.func @transform_18(%arg0: i32) -> (i32, i32) {
    %c0_i32 = arith.constant 0 : i32
    %c0_i32_0 = arith.constant 0 : i32
    %c0_i32_1 = arith.constant 0 : i32
    return %c0_i32, %c0_i32_0 : i32, i32
  }
  func.func @transform_19(%arg0: i32) -> (i32, i32) {
    %c0_i32 = arith.constant 0 : i32
    %c0_i32_0 = arith.constant 0 : i32
    %c0_i32_1 = arith.constant 0 : i32
    return %c0_i32, %c0_i32_0 : i32, i32
  }
}

</mosaic_0001>

<bundles_post_ra>
// kernel: tpu_custom_call.1
= control target key start
LH: loop header
LB: loop body
LE: loop exit
PB: predicated region body
PF: predicated region fallthrough
CT: control target
= control target key end

     0   :  { %s3769_s0 = inlined_call_operand.vmem [shape: f32[6,16,10], index: 0, kind: input, shape index: {}]   ;;  %s3770_s1 = inlined_call_operand.vmem [shape: f32[16,16], index: 1, kind: input, shape index: {}]   ;;  %s3771_s2 = inlined_call_operand.vmem [shape: f32[16,2], index: 2, kind: input, shape index: {}]   ;;  %s3772_s3 = inlined_call_operand.vmem [shape: f32[1,16], index: 3, kind: input, shape index: {}]   ;;  %s3773_s4 = inlined_call_operand.vmem [shape: f32[10,32], index: 4, kind: input, shape index: {}]   ;;  %s3774_s5 = inlined_call_operand.vmem [shape: f32[10,32], index: 5, kind: input, shape index: {}]   ;;  %s3775_s6 = inlined_call_operand.vmem [shape: f32[1,32], index: 6, kind: input, shape index: {}]   ;;  %s3776_s7 = inlined_call_operand.vmem [shape: f32[32,128], index: 7, kind: input, shape index: {}]   ;;  %s3777_s8 = inlined_call_operand.vmem [shape: f32[32,128], index: 8, kind: input, shape index: {}]   ;;  %s3778_s9 = inlined_call_operand.vmem [shape: f32[1,128], index: 9, kind: input, shape index: {}]   ;;  %s3779_s10 = inlined_call_operand.vmem [shape: f32[32,32], index: 10, kind: input, shape index: {}]   ;;  %s3780_s11 = inlined_call_operand.vmem [shape: f32[1,32], index: 11, kind: input, shape index: {}]   ;;  %s3781_s12 = inlined_call_operand.vmem [shape: f32[272,32], index: 12, kind: input, shape index: {}]   ;;  %s3782_s13 = inlined_call_operand.vmem [shape: f32[1,32], index: 13, kind: input, shape index: {}]   ;;  %s3783_s14 = inlined_call_operand.vmem [shape: f32[32,2], index: 14, kind: input, shape index: {}]   ;;  %s3784_s15 = inlined_call_operand.<no memory space> [shape: f32[1,1], index: 15, kind: input, shape index: {}]   ;;  %s3785_s16 = inlined_call_operand.vmem [shape: f32[16,3], index: 16, kind: output, shape index: {0}]   ;;  %s3786_s17 = inlined_call_operand.hbm [shape: f32[1,16], index: 17, kind: output, shape index: {1}]   ;;  %s3787_s18 = inlined_call_operand.hbm [shape: f32[1,16], index: 18, kind: output, shape index: {2}]   ;;  %s3788_s19 = inlined_call_operand.hbm [shape: f32[6,32], index: 19, kind: output, shape index: {3}]  }
   0x1   :  { %3792 = sst [smem:[#allocation10_spill]] %s3769_s0  ;;  %v25_v0 = vstv %s3784_s15 }
   0x2   :  { %3793 = sst [smem:[#allocation11_spill]] %s3770_s1  ;;  %26 = vst [vmem:[#allocation2] sm:$0x1] %v25_v0 }
   0x3   :  { %3794 = sst [smem:[#allocation12_spill]] %s3771_s2 }
   0x4   :  { %3795 = sst [smem:[#allocation13_spill]] %s3772_s3 }
   0x5   :  { %27 = vsyncpa [#allocation4], 0  ;;  %s3796_s1 = sld [smem:[#allocation10_spill]]  ;;  %s3797_s25 = sld [smem:[#allocation11_spill]]  ;;  %vm70_vm0 = vcmask 130048   ;;  %vm159_vm1 = vcmask 1041408  }
   0x6   :  { %vm152_vm2 = vcmask 80896   ;;  %v65_v8 = vld [vmem:[%s3774_s5] sm:$0xff]  ;;  %v66_v9 = vld [vmem:[%s3774_s5 + $0x8] sm:$0x3]  ;;  %vm3208_vm3 = vmmov 1  }
   0x7   :  { %vm3350_vm4 = vmpackc.low %vm159_vm1, %vm3208_vm3  ;;  %v2917_v11 = vpack.c.bf16 %v66_v9, %v65_v8  ;;  %v63_v12 = vld [vmem:[%s3773_s4] sm:$0xff]  ;;  %v64_v13 = vld [vmem:[%s3773_s4 + $0x8] sm:$0x3] }
   0xb   :  { %v68_v1 = vld [vmem:[%s3796_s1] sm:$0xff]  ;;  %v69_v2 = vld [vmem:[%s3796_s1 + $0x8] sm:$0xff]  ;;  %v2512_v5 = vld [vmem:[%s3796_s1 + $0x10] sm:$0xff] }
   0xc   :  { %v3333_v3 = vld [vmem:[%s3797_s25] sm:$0xff]  ;;  %v2913_v4 = vpack.c.bf16 %v69_v2, %v68_v1  ;;  %v2513_v6 = vld [vmem:[%s3796_s1 + $0x18] sm:$0xff]  ;;  %2690 = vmatprep.mubr.msk.f32.mxu1 %vm152_vm2, %v68_v1 }
   0xd   :  { %2683 = vmatprep.mubr.msk.f32.mxu0 %vm70_vm0, %v3333_v3  ;;  %v2929_v7 = vpack.c.bf16 %v2513_v6, %v2512_v5 }
   0xe   :  { %2914 = vmatprep.subr.bf16.mxu0 %v2913_v4 }
   0xf   :  { %28 = vsyncpa [#allocation6], 0  ;;  %2916 = vmatpush3.bf16.msra.mxu0 %v2913_v4  ;;  %v3364_v14 = vld [vmem:[%s3797_s25 + $0x8] sm:$0xff]  ;;  %v2923_v15 = vpack.c.bf16 %v64_v13, %v63_v12  ;;  %2919 = vmatprep.subr.msk.bf16.mxu1 %vm3350_vm4, %v2917_v11  ;;  %v2522_v16 = vld [vmem:[%s3796_s1 + $0x30] sm:$0xff]  ;;  %vm332_vm5 = vcmask 261120   ;;  %v3209_v52 = vmov 0.0|0.0  }
  0x10   :  { %2930 = vmatprep.subr.bf16.mxu0 %v2929_v7  ;;  %2922 = vmatpush3.bf16.msk.msra.mxu1 %vm3350_vm4, %v2917_v11  ;;  %v2523_v17 = vld [vmem:[%s3796_s1 + $0x38] sm:$0xff]  ;;  %v2532_v19 = vld [vmem:[%s3796_s1 + $0x50] sm:$0xff]  ;;  %v3438_v26 = vld [vmem:[%s3775_s6] ss:$0 sm:$0xff]  ;;  %vm3210_vm6 = vmmov 0   ;;  %v3211_v56 = vmov 0.0  }
  0x11   :  { %2925 = vmatprep.subr.msk.bf16.mxu1 %vm3350_vm4, %v2923_v15  ;;  %v2945_v18 = vpack.c.bf16 %v2523_v17, %v2522_v16  ;;  %v2533_v20 = vld [vmem:[%s3796_s1 + $0x58] sm:$0xff]  ;;  %v1117_v49 = vld [vmem:[%s3776_s7] sm:$0xff]  ;;  %v1118_v50 = vld [vmem:[%s3776_s7 + $0x8] sm:$0xff]  ;;  %vm1106_vm7 = vcmask 1040384   ;;  %vm1109_vm8 = vcmask 1042432   ;;  %vm1111_vm9 = vcmask 1043456  }
  0x12   :  { %2684 = vmatmul.mubr.msk.f32.vlgmr.msra.gmra.mrb[0].mxu0 %vm70_vm0, %v3364_v14  ;;  %v2961_v21 = vpack.c.bf16 %v2533_v20, %v2532_v19  ;;  %v2978_v51 = vpack.c.bf16 %v1118_v50, %v1117_v49  ;;  %v1119_v53 = vld [vmem:[%s3776_s7 + $0x10] sm:$0xff]  ;;  %v1120_v54 = vld [vmem:[%s3776_s7 + $0x18] sm:$0xff]  ;;  %v1201_v57 = vld [vmem:[%s3777_s8] sm:$0xff]  ;;  %vm1113_vm10 = vcmask 1044480   ;;  %vm1115_vm11 = vcmask 259072   ;;  %s3212_s28 = smov 64  }
  0x13   :  { %2932 = vmatpush3.bf16.msra.mxu0 %v2929_v7  ;;  %2704 = vmatprep.mubr.msk.f32.mxu0 %vm70_vm0, %v3333_v3  ;;  %v2981_v55 = vpack.c.bf16 %v1120_v54, %v1119_v53  ;;  %v1202_v58 = vld [vmem:[%s3777_s8 + $0x8] sm:$0xff]  ;;  %v1203_v60 = vld [vmem:[%s3777_s8 + $0x10] sm:$0xff]  ;;  %v1204_v61 = vld [vmem:[%s3777_s8 + $0x18] sm:$0xff]  ;;  %vm1918_vm12 = vcmask 122880   ;;  %s3214_s5 = smov 112   ;;  %s3800_s27 = sld [smem:[#allocation13_spill]] }
  0x14   :  { %2691 = vmatmul.mubr.msk.f32.vlgmr.msra.gmra.mrb[0].mxu1 %vm152_vm2, %v69_v2  ;;  %2935 = vmatprep.subr.msk.bf16.mxu0 %vm3350_vm4, %v2917_v11  ;;  %v3478_v59 = vpack.c.bf16 %v1202_v58, %v1201_v57  ;;  %v3488_v62 = vpack.c.bf16 %v1204_v61, %v1203_v60  ;;  %s3217_s23 = smov [#allocation5]   ;;  %s3218_s24 = smov [#allocation3]  }
  0x15   :  { %2928 = vmatpush3.bf16.msk.msra.mxu1 %vm3350_vm4, %v2923_v15  ;;  %s2476_s4 = sshll.u32 %s3217_s23, 4  ;;  %s2477_s4 = int_to_ptr.vmem [resolvable:$true] %s2476_s4 }
  0x16   :  { %2705 = vmatmul.mubr.msk.f32.vlgmr.msra.gmra.mrb[2].mxu0 %vm70_vm0, %v3364_v14  ;;  %2946 = vmatprep.subr.bf16.mxu1 %v2945_v18  ;;  %s3138_s25 = scalar_lea.vmem %s2477_s4, 16  ;;  %p3143_p1 = scmp.lt.s32.totalorder %s2477_s4, %s2477_s4 }
  0x17   :  { %2938 = vmatpush3.bf16.msk.msra.mxu0 %vm3350_vm4, %v2917_v11  ;;  %2711 = vmatprep.mubr.msk.f32.mxu0 %vm152_vm2, %v2512_v5  ;;  %p3139_p0 = scmp.ne.s32.totalorder %s2477_s4, %s3138_s25 }
  0x18   :  { %2941 = vmatprep.subr.msk.bf16.mxu0 %vm3350_vm4, %v2923_v15 }
  0x1a   :  { %2712 = vmatmul.mubr.msk.f32.vlgmr.msra.gmra.mrb[4].mxu0 %vm152_vm2, %v2513_v6 }
  0x1b   :  { %2944 = vmatpush3.bf16.msk.msra.mxu0 %vm3350_vm4, %v2923_v15 }
  0x1c   :  { %2962 = vmatprep.subr.bf16.mxu0 %v2961_v21 }
  0xe5   :  { %v2685_v22 = vpop.f32.mrb[0].mxu0 }
  0xe6   :  { %v143_v23 = vpop.f32.mrb[1].mxu0 }
  0xe7   :  { %2697 = vmatprep.mubr.msk.f32.mxu1 %vm152_vm2, %v143_v23 }
  0xe8   :  { %2698 = vmatmul.mubr.msk.f32.vlgmr.msra.gmra.mrb[0].mxu1 %vm152_vm2, %v2685_v22 }
  0xe9   :  { %v2706_v24 = vpop.f32.mrb[2].mxu0  ;;  %2948 = vmatpush3.bf16.msra.mxu1 %v2945_v18  ;;  %2725 = vmatprep.mubr.msk.f32.mxu1 %vm70_vm0, %v3333_v3 }
  0xea   :  { %v413_v25 = vpop.f32.mrb[3].mxu0  ;;  %2951 = vmatprep.subr.msk.bf16.mxu1 %vm3350_vm4, %v2917_v11 }
  0xeb   :  { %2718 = vmatprep.mubr.msk.f32.mxu0 %vm152_vm2, %v413_v25 }
  0xec   :  { %2719 = vmatmul.mubr.msk.f32.vlgmr.msra.gmra.mrb[4].mxu0 %vm152_vm2, %v2706_v24  ;;  %2726 = vmatmul.mubr.msk.f32.vlgmr.msra.gmra.mrb[2].mxu1 %vm70_vm0, %v3364_v14 }
  0xed   :  { %2964 = vmatpush3.bf16.msra.mxu0 %v2961_v21  ;;  %2746 = vmatprep.mubr.msk.f32.mxu0 %vm70_vm0, %v3333_v3 }
  0xee   :  { %2954 = vmatpush3.bf16.msk.msra.mxu1 %vm3350_vm4, %v2917_v11  ;;  %2732 = vmatprep.mubr.msk.f32.mxu1 %vm152_vm2, %v2522_v16 }
  0xef   :  { %2967 = vmatprep.subr.msk.bf16.mxu0 %vm3350_vm4, %v2917_v11  ;;  %2957 = vmatprep.subr.msk.bf16.mxu1 %vm3350_vm4, %v2923_v15 }
  0xf0   :  { %2747 = vmatmul.mubr.msk.f32.vlgmr.msra.gmra.mrb[6].mxu0 %vm70_vm0, %v3364_v14 }
  0xf1   :  { %2733 = vmatmul.mubr.msk.f32.vlgmr.msra.gmra.mrb[4].mxu1 %vm152_vm2, %v2523_v17  ;;  %2970 = vmatpush3.bf16.msk.msra.mxu0 %vm3350_vm4, %v2917_v11 }
  0xf2   :  { %2960 = vmatpush3.bf16.msk.msra.mxu1 %vm3350_vm4, %v2923_v15  ;;  %2753 = vmatprep.mubr.msk.f32.mxu0 %vm152_vm2, %v2532_v19 }
  0xf3   :  { %2973 = vmatprep.subr.msk.bf16.mxu0 %vm3350_vm4, %v2923_v15  ;;  %2989 = vmatprep.subr.bf16.mxu1 %v3209_v52 }
  0xf4   :  { %2754 = vmatmul.mubr.msk.f32.vlgmr.msra.gmra.mrb[8].mxu0 %vm152_vm2, %v2533_v20 }
  0xf5   :  { %2976 = vmatpush3.bf16.msk.msra.mxu0 %vm3350_vm4, %v2923_v15 }
  0xf6   :  { %2977 = vmatprep.subr.bf16.mxu0 %v3209_v52 }
 0x1bb   :  { %v2699_v27 = vpop.f32.mrb[0].mxu1 }
 0x1bc   :  { %v329_v28 = vadd.f32 %v2699_v27, %v3438_v26  ;;  %v313_v29 = vpop.f32.mrb[1].mxu1 }
 0x1bd   :  { %v328_v30 = vadd.f32 %v3438_v26, %v313_v29 }
 0x1be   :  { %v331_v31 = vmax.f32 %v329_v28, 0.0 }
 0x1bf   :  { %v330_v32 = vmax.f32 %v328_v30, 0.0  ;;  %v2720_v33 = vpop.f32.mrb[4].mxu0  ;;  %v2727_v34 = vpop.f32.mrb[2].mxu1 }
 0x1c0   :  { %v334_v35 = vsel %vm332_vm5, %v331_v31, 0.0  ;;  %v585_v36 = vadd.f32 %v2720_v33, %v3438_v26  ;;  %v575_v37 = vpop.f32.mrb[5].mxu0  ;;  %v667_v38 = vpop.f32.mrb[3].mxu1 }
 0x1c1   :  { %v333_v39 = vsel %vm332_vm5, %v330_v32, 0.0  ;;  %v584_v40 = vadd.f32 %v3438_v26, %v575_v37  ;;  %2739 = vmatprep.mubr.msk.f32.mxu1 %vm152_vm2, %v667_v38 }
 0x1c2   :  { %v335_v41 = vadd.f32 %v334_v35, %v333_v39  ;;  %v587_v42 = vmax.f32 %v585_v36, 0.0  ;;  %2740 = vmatmul.mubr.msk.f32.vlgmr.msra.gmra.mrb[4].mxu1 %vm152_vm2, %v2727_v34 }
 0x1c3   :  { %v586_v43 = vmax.f32 %v584_v40, 0.0  ;;  %v2748_v44 = vpop.f32.mrb[6].mxu0  ;;  %2793 = vmatprep.mubr.msk.f32.mxu1 %vm3210_vm6, %v3211_v56  ;;  %2991 = vmatpush3.bf16.msra.mxu1 %v3478_v59 }
 0x1c4   :  { %v589_v45 = vsel %vm332_vm5, %v587_v42, 0.0  ;;  %v921_v46 = vpop.f32.mrb[7].mxu0  ;;  %2992 = vmatprep.subr.bf16.mxu1 %v3209_v52  ;;  %v336_v0 = vrot.slane %v335_v41, 4 }
 0x1c5   :  { %v588_v47 = vsel %vm332_vm5, %v586_v43, 0.0  ;;  %2760 = vmatprep.mubr.msk.f32.mxu0 %vm152_vm2, %v921_v46 }
 0x1c6   :  { %v590_v48 = vadd.f32 %v589_v45, %v588_v47  ;;  %2761 = vmatmul.mubr.msk.f32.vlgmr.msra.gmra.mrb[8].mxu0 %vm152_vm2, %v2748_v44  ;;  %v337_v2 = vadd.f32 %v336_v0, %v335_v41 }
 0x1c7   :  { %2979 = vmatpush3.bf16.msra.mxu0 %v2978_v51  ;;  %2771 = vmatprep.mubr.msk.f32.mxu0 %vm3210_vm6, %v3211_v56 }
 0x1c8   :  { %2980 = vmatprep.subr.bf16.mxu0 %v3209_v52  ;;  %2994 = vmatpush3.bf16.msra.mxu1 %v3488_v62  ;;  %v591_v63 = vrot.slane %v590_v48, 4  ;;  %v338_v6 = vrot.slane %v337_v2, 2 }
 0x1c9   :  { %3001 = vmatprep.subr.bf16.mxu1 %v3209_v52 }
 0x1ca   :  { %v592_v1 = vadd.f32 %v591_v63, %v590_v48  ;;  %v339_v15 = vadd.f32 %v338_v6, %v337_v2 }
 0x1cb   :  { %2982 = vmatpush3.bf16.msra.mxu0 %v2981_v55  ;;  %v2542_v55 = vld [vmem:[%s3778_s9] ss:$0 sm:$0xff]  ;;  %s3213_s9 = smov 32  }
 0x1cc   :  { %2983 = vmatprep.subr.bf16.mxu0 %v3209_v52  ;;  %v593_v4 = vrot.slane %v592_v1, 2  ;;  %v340_v25 = vrot.slane %v339_v15, 1 }
 0x1ce   :  { %v594_v10 = vadd.f32 %v593_v4, %v592_v1  ;;  %v341_v33 = vadd.f32 %v340_v25, %v339_v15 }
 0x1d0   :  { %v595_v21 = vrot.slane %v594_v10, 1  ;;  %v3502_v38 = vmul.f32 0.0625, %v341_v33 }
 0x1d2   :  { %v596_v30 = vadd.f32 %v595_v21, %v594_v10 }
 0x1d4   :  { %v3500_v36 = vmul.f32 0.0625, %v596_v30 }
 0x1d6   :  { %v1107_v43 = vsel %vm1106_vm7, %v3502_v38, %v3500_v36 }
 0x1d7   :  { %v1108_v46 = vsel %vm159_vm1, %v1107_v43, 0.0 }
 0x295   :  { %v2741_v5 = vpop.f32.mrb[4].mxu1 }
 0x296   :  { %v839_v7 = vadd.f32 %v2741_v5, %v3438_v26  ;;  %v829_v8 = vpop.f32.mrb[5].mxu1 }
 0x297   :  { %v838_v9 = vadd.f32 %v3438_v26, %v829_v8 }
 0x298   :  { %v841_v11 = vmax.f32 %v839_v7, 0.0 }
 0x299   :  { %v840_v12 = vmax.f32 %v838_v9, 0.0  ;;  %v2762_v13 = vpop.f32.mrb[8].mxu0 }
 0x29a   :  { %v843_v16 = vsel %vm332_vm5, %v841_v11, 0.0  ;;  %v1093_v17 = vadd.f32 %v2762_v13, %v3438_v26  ;;  %v1083_v18 = vpop.f32.mrb[9].mxu0 }
 0x29b   :  { %v842_v19 = vsel %vm332_vm5, %v840_v12, 0.0  ;;  %v1092_v20 = vadd.f32 %v3438_v26, %v1083_v18 }
 0x29c   :  { %v844_v22 = vadd.f32 %v843_v16, %v842_v19  ;;  %v1095_v23 = vmax.f32 %v1093_v17, 0.0 }
 0x29d   :  { %v1094_v24 = vmax.f32 %v1092_v20, 0.0 }
 0x29e   :  { %v845_v27 = vrot.slane %v844_v22, 4  ;;  %v1097_v28 = vsel %vm332_vm5, %v1095_v23, 0.0 }
 0x29f   :  { %v1096_v29 = vsel %vm332_vm5, %v1094_v24, 0.0 }
 0x2a0   :  { %v846_v31 = vadd.f32 %v845_v27, %v844_v22  ;;  %v1098_v32 = vadd.f32 %v1097_v28, %v1096_v29 }
 0x2a2   :  { %v847_v34 = vrot.slane %v846_v31, 2  ;;  %v1099_v35 = vrot.slane %v1098_v32, 4 }
 0x2a4   :  { %v848_v37 = vadd.f32 %v847_v34, %v846_v31  ;;  %v1100_v26 = vadd.f32 %v1099_v35, %v1098_v32 }
 0x2a6   :  { %v849_v39 = vrot.slane %v848_v37, 1  ;;  %v1101_v40 = vrot.slane %v1100_v26, 2 }
 0x2a8   :  { %v850_v41 = vadd.f32 %v849_v39, %v848_v37  ;;  %v1102_v42 = vadd.f32 %v1101_v40, %v1100_v26 }
 0x2aa   :  { %v3506_v44 = vmul.f32 0.0625, %v850_v41  ;;  %v1103_v45 = vrot.slane %v1102_v42, 1 }
 0x2ac   :  { %v1104_v47 = vadd.f32 %v1103_v45, %v1102_v42  ;;  %v1110_v48 = vsel %vm1109_vm8, %v1108_v46, %v3506_v44 }
 0x2ad   :  { %v1112_v50 = vsel %vm1111_vm9, %v1110_v48, 0.0 }
 0x2ae   :  { %v3510_v49 = vmul.f32 0.0625, %v1104_v47 }
 0x2b0   :  { %v1114_v51 = vsel %vm1113_vm10, %v1112_v50, %v3510_v49 }
 0x2b1   :  { %2772 = vmatmul.mubr.msk.f32.vlgmr.msra.gmra.mrb[10].mxu0 %vm332_vm5, %v1114_v51  ;;  %1116 = vst.msk [vmem:[#allocation7] sm:$0x3f] %vm1115_vm11, %v1114_v51 }
 0x2b2   :  { %2985 = vmatpush3.bf16.msra.mxu0 %v3478_v59  ;;  %2782 = vmatprep.mubr.msk.f32.mxu0 %vm3210_vm6, %v3211_v56 }
 0x2b3   :  { %2986 = vmatprep.subr.bf16.mxu0 %v3209_v52 }
 0x2b6   :  { %2988 = vmatpush3.bf16.msra.mxu0 %v3488_v62 }
 0x2b7   :  { %2995 = vmatprep.subr.bf16.mxu0 %v3209_v52 }
 0x2b9   :  { %2783 = vmatmul.mubr.f32.vlgmr.msra.gmra.mrb[12].mxu0 %v3211_v56 }
 0x2ba   :  { %2997 = vmatpush3.bf16.msra.mxu0 %v3478_v59  ;;  %2804 = vmatprep.mubr.msk.f32.mxu0 %vm3210_vm6, %v3211_v56 }
 0x2bb   :  { %2998 = vmatprep.subr.bf16.mxu0 %v3209_v52 }
 0x2be   :  { %3000 = vmatpush3.bf16.msra.mxu0 %v3488_v62 }
 0x2bf   :  { %3007 = vmatprep.subr.bf16.mxu0 %v3209_v52 }
 0x384   :  { %v1197_v53 = vpop.f32.mrb[10].mxu0 }
 0x385   :  { %v2773_v54 = vpop.f32.mrb[11].mxu0  ;;  %v3530_v57 = vadd.f32 %v2542_v55, %v1197_v53 }
 0x38c   :  { %v1274_v58 = vpop.f32.mrb[12].mxu0 }
 0x38d   :  { %v1278_v60 = vadd.f32 %v1274_v58, %v3530_v57  ;;  %v2784_v61 = vpop.f32.mrb[13].mxu0 }
 0x38f   :  { %3088 = vtanh.f32 %v1278_v60  ;;  %v2544_v0 = vmul.f32 -1.442695, %v1278_v60 }
 0x391   :  { %3090 = vpow2.f32 %v2544_v0 }
 0x399   :  { %v3089_v63 = vpop.eup %3088 }
 0x39a   :  { %1288 = vrot.lane.b32.xlu0 %v3089_v63, %s3212_s28 }
 0x39b   :  { %v3091_v1 = vpop.eup %3090 }
 0x39c   :  { %v1282_v2 = vadd.f32 1.0, %v3091_v1 }
 0x39e   :  { %3092 = vrcp.f32 %v1282_v2 }
 0x3a8   :  { %v3093_v4 = vpop.eup %3092 }
 0x3a9   :  { %v1286_v7 = vmul.f32 0.0, %v3093_v4 }
 0x40c   :  { %v1289_v5 = vpop.permute.xlu0 %1288 }
 0x40d   :  { %v1291_v6 = vmul.f32 %v3093_v4, %v1289_v5 }
 0x40f   :  { %1293 = vrot.lane.b32.xlu0 %v1291_v6, %s3213_s9 }
 0x481   :  { %v1294_v8 = vpop.permute.xlu0 %1293 }
 0x482   :  { %v1296_v9 = vadd.f32 %v1294_v8, %v1286_v7 }
 0x484   :  { %3094 = vtanh.f32 %v1296_v9  ;;  %v1390_v27 = vrot.slane %v1296_v9, 7 }
 0x48e   :  { %v3095_v10 = vpop.eup %3094 }
 0x48f   :  { %1299 = vrot.lane.b32.xlu1 %v3095_v10, %s3212_s28 }
 0x501   :  { %v1300_v11 = vpop.permute.xlu1 %1299 }
 0x502   :  { %v1302_v12 = vmul.f32 %v3093_v4, %v1300_v11 }
 0x504   :  { %1304 = vrot.lane.b32.xlu1 %v1302_v12, %s3213_s9 }
 0x576   :  { %v1305_v13 = vpop.permute.xlu1 %1304 }
 0x577   :  { %2794 = vmatmul.mubr.msk.f32.vlgmr.msra.gmra.mrb[6].mxu1 %vm332_vm5, %v1305_v13 }
 0x578   :  { %3003 = vmatpush3.bf16.msra.mxu1 %v3478_v59  ;;  %2815 = vmatprep.mubr.msk.f32.mxu1 %vm3210_vm6, %v3211_v56 }
 0x579   :  { %3004 = vmatprep.subr.bf16.mxu1 %v3209_v52 }
 0x57c   :  { %3006 = vmatpush3.bf16.msra.mxu1 %v3488_v62 }
 0x57d   :  { %3013 = vmatprep.subr.bf16.mxu1 %v3209_v52 }
 0x64a   :  { %v1374_v15 = vpop.f32.mrb[6].mxu1 }
 0x64b   :  { %v1379_v16 = vrot.slane %v1374_v15, 7  ;;  %v2795_v17 = vpop.f32.mrb[7].mxu1 }
 0x64d   :  { %v1381_v18 = vadd.f32 %v1379_v16, %v3530_v57 }
 0x64f   :  { %3096 = vtanh.f32 %v1381_v18  ;;  %v2546_v20 = vmul.f32 -1.442695, %v1381_v18 }
 0x651   :  { %3098 = vpow2.f32 %v2546_v20 }
 0x659   :  { %v3097_v19 = vpop.eup %3096 }
 0x65a   :  { %1394 = vrot.lane.b32.xlu0 %v3097_v19, %s3212_s28 }
 0x65b   :  { %v3099_v21 = vpop.eup %3098 }
 0x65c   :  { %v1385_v22 = vadd.f32 1.0, %v3099_v21 }
 0x65e   :  { %3100 = vrcp.f32 %v1385_v22 }
 0x668   :  { %v3101_v23 = vpop.eup %3100 }
 0x669   :  { %v1392_v28 = vmul.f32 %v3101_v23, %v1390_v27 }
 0x6cc   :  { %v1395_v24 = vpop.permute.xlu0 %1394 }
 0x6cd   :  { %v1397_v25 = vmul.f32 %v3101_v23, %v1395_v24 }
 0x6cf   :  { %1399 = vrot.lane.b32.xlu1 %v1397_v25, %s3213_s9 }
 0x741   :  { %v1400_v29 = vpop.permute.xlu1 %1399 }
 0x742   :  { %v1402_v30 = vadd.f32 %v1400_v29, %v1392_v28 }
 0x744   :  { %3102 = vtanh.f32 %v1402_v30  ;;  %v1497_v50 = vrot.slane %v1402_v30, 7 }
 0x74e   :  { %v3103_v31 = vpop.eup %3102 }
 0x74f   :  { %1405 = vrot.lane.b32.xlu0 %v3103_v31, %s3212_s28 }
 0x7c1   :  { %v1406_v32 = vpop.permute.xlu0 %1405 }
 0x7c2   :  { %v1408_v33 = vmul.f32 %v3101_v23, %v1406_v32 }
 0x7c4   :  { %v1410_v34 = vrot.slane %v1408_v33, 1 }
 0x7c6   :  { %1411 = vrot.lane.b32.xlu1 %v1410_v34, %s3213_s9 }
 0x838   :  { %v1412_v35 = vpop.permute.xlu1 %1411 }
 0x839   :  { %2805 = vmatmul.mubr.msk.f32.vlgmr.msra.gmra.mrb[14].mxu0 %vm332_vm5, %v1412_v35 }
 0x83a   :  { %3009 = vmatpush3.bf16.msra.mxu0 %v3478_v59  ;;  %2826 = vmatprep.mubr.msk.f32.mxu0 %vm3210_vm6, %v3211_v56 }
 0x83b   :  { %3010 = vmatprep.subr.bf16.mxu0 %v3209_v52 }
 0x83e   :  { %3012 = vmatpush3.bf16.msra.mxu0 %v3488_v62 }
 0x83f   :  { %3019 = vmatprep.subr.bf16.mxu0 %v3209_v52 }
 0x90c   :  { %v1481_v37 = vpop.f32.mrb[14].mxu0 }
 0x90d   :  { %v1486_v26 = vrot.slane %v1481_v37, 6  ;;  %v2806_v39 = vpop.f32.mrb[15].mxu0 }
 0x90f   :  { %v1488_v40 = vadd.f32 %v1486_v26, %v3530_v57 }
 0x911   :  { %3104 = vtanh.f32 %v1488_v40  ;;  %v2548_v42 = vmul.f32 -1.442695, %v1488_v40 }
 0x913   :  { %3106 = vpow2.f32 %v2548_v42 }
 0x91b   :  { %v3105_v41 = vpop.eup %3104 }
 0x91c   :  { %1501 = vrot.lane.b32.xlu0 %v3105_v41, %s3212_s28 }
 0x91d   :  { %v3107_v43 = vpop.eup %3106 }
 0x91e   :  { %v1492_v45 = vadd.f32 1.0, %v3107_v43 }
 0x920   :  { %3108 = vrcp.f32 %v1492_v45 }
 0x92a   :  { %v3109_v46 = vpop.eup %3108 }
 0x92b   :  { %v1499_v51 = vmul.f32 %v3109_v46, %v1497_v50 }
 0x98e   :  { %v1502_v47 = vpop.permute.xlu0 %1501 }
 0x98f   :  { %v1504_v48 = vmul.f32 %v3109_v46, %v1502_v47 }
 0x991   :  { %1506 = vrot.lane.b32.xlu1 %v1504_v48, %s3213_s9 }
 0xa03   :  { %v1507_v53 = vpop.permute.xlu1 %1506 }
 0xa04   :  { %v1509_v54 = vadd.f32 %v1507_v53, %v1499_v51 }
 0xa06   :  { %3110 = vtanh.f32 %v1509_v54 }
 0xa10   :  { %v3111_v55 = vpop.eup %3110 }
 0xa11   :  { %1512 = vrot.lane.b32.xlu0 %v3111_v55, %s3212_s28 }
 0xa83   :  { %v1513_v58 = vpop.permute.xlu0 %1512 }
 0xa84   :  { %v1515_v60 = vmul.f32 %v3109_v46, %v1513_v58 }
 0xa86   :  { %v1517_v61 = vrot.slane %v1515_v60, 2 }
 0xa88   :  { %1518 = vrot.lane.b32.xlu1 %v1517_v61, %s3213_s9 }
 0xafa   :  { %v1519_v63 = vpop.permute.xlu1 %1518 }
 0xafb   :  { %2816 = vmatmul.mubr.msk.f32.vlgmr.msra.gmra.mrb[8].mxu1 %vm332_vm5, %v1519_v63 }
 0xafc   :  { %3015 = vmatpush3.bf16.msra.mxu1 %v3478_v59  ;;  %2837 = vmatprep.mubr.msk.f32.mxu1 %vm3210_vm6, %v3211_v56 }
 0xafd   :  { %3016 = vmatprep.subr.bf16.mxu1 %v3209_v52 }
 0xb00   :  { %3018 = vmatpush3.bf16.msra.mxu1 %v3488_v62  ;;  %v1604_v62 = vrot.slane %v1509_v54, 7 }
 0xb01   :  { %3025 = vmatprep.subr.bf16.mxu1 %v3209_v52 }
 0xbce   :  { %v1588_v0 = vpop.f32.mrb[8].mxu1 }
 0xbcf   :  { %v1593_v1 = vrot.slane %v1588_v0, 5  ;;  %v2817_v2 = vpop.f32.mrb[9].mxu1  ;;  %v1838_v0 = vld [vmem:[%s3779_s10 + $0x8] sm:$0xff] }
 0xbd1   :  { %v1595_v4 = vadd.f32 %v1593_v1, %v3530_v57  ;;  %v1839_v1 = vld [vmem:[%s3779_s10 + $0x10] sm:$0xff] }
 0xbd3   :  { %3112 = vtanh.f32 %v1595_v4  ;;  %v2550_v6 = vmul.f32 -1.442695, %v1595_v4  ;;  %v1840_v4 = vld [vmem:[%s3779_s10 + $0x18] sm:$0xff] }
 0xbd5   :  { %3114 = vpow2.f32 %v2550_v6 }
 0xbdd   :  { %v3113_v5 = vpop.eup %3112 }
 0xbde   :  { %1608 = vrot.lane.b32.xlu0 %v3113_v5, %s3212_s28  ;;  %v3023_v5 = vpack.c.bf16 %v1840_v4, %v1839_v1  ;;  %v2262_v1 = vld [vmem:[%s3781_s12 + $0xc8] sm:$0xff]  ;;  %v2346_v4 = vld [vmem:[%s3783_s14 + $0x10] sm:$0xff] }
 0xbdf   :  { %v3115_v59 = vpop.eup %3114 }
 0xbe0   :  { %v1599_v7 = vadd.f32 1.0, %v3115_v59 }
 0xbe2   :  { %3116 = vrcp.f32 %v1599_v7 }
 0xbec   :  { %v3117_v8 = vpop.eup %3116 }
 0xbed   :  { %v1606_v11 = vmul.f32 %v3117_v8, %v1604_v62  ;;  %v1841_v62 = vld [vmem:[%s3780_s11] sm:$0x1]  ;;  %s2466_s11 = sshll.u32 %s3218_s24, 4  ;;  %s2467_s11 = int_to_ptr.vmem [resolvable:$true] %s2466_s11 }
 0xc50   :  { %v1609_v9 = vpop.permute.xlu0 %1608 }
 0xc51   :  { %v1611_v10 = vmul.f32 %v3117_v8, %v1609_v9  ;;  %v2338_v9 = vsel %vm70_vm0, %v3333_v3, 0.0 }
 0xc53   :  { %1613 = vrot.lane.b32.xlu1 %v1611_v10, %s3213_s9 }
 0xcc5   :  { %v1614_v12 = vpop.permute.xlu1 %1613 }
 0xcc6   :  { %v1616_v13 = vadd.f32 %v1614_v12, %v1606_v11 }
 0xcc8   :  { %3118 = vtanh.f32 %v1616_v13  ;;  %v1711_v32 = vrot.slane %v1616_v13, 7 }
 0xcd2   :  { %v3119_v15 = vpop.eup %3118 }
 0xcd3   :  { %1619 = vrot.lane.b32.xlu0 %v3119_v15, %s3212_s28 }
 0xd45   :  { %v1620_v16 = vpop.permute.xlu0 %1619 }
 0xd46   :  { %v1622_v17 = vmul.f32 %v3117_v8, %v1620_v16  ;;  %v3215_v16 = vmov 1966171168  }
 0xd48   :  { %v1624_v18 = vrot.slane %v1622_v17, 3  ;;  %v1931_v17 = vunpack.c.l.s4 %v3215_v16 }
 0xd4a   :  { %1625 = vrot.lane.b32.xlu1 %v1624_v18, %s3213_s9  ;;  %v1933_v18 = vlaneseq }
 0xdbc   :  { %v1626_v19 = vpop.permute.xlu1 %1625 }
 0xdbd   :  { %2827 = vmatmul.mubr.msk.f32.vlgmr.msra.gmra.mrb[16].mxu0 %vm332_vm5, %v1626_v19  ;;  %v1949_v19 = vld [vmem:[%s3781_s12] sm:$0xff] }
 0xdbe   :  { %2848 = vmatprep.mubr.msk.f32.mxu0 %vm3210_vm6, %v3211_v56 }
 0xe90   :  { %v1695_v20 = vpop.f32.mrb[16].mxu0 }
 0xe91   :  { %v1700_v21 = vrot.slane %v1695_v20, 4  ;;  %v2828_v22 = vpop.f32.mrb[17].mxu0  ;;  %v1950_v20 = vld [vmem:[%s3781_s12 + $0x8] sm:$0xff] }
 0xe92   :  { %v1932_v22 = vunpack.c.0.s8 %v1931_v17 }
 0xe93   :  { %v1702_v23 = vadd.f32 %v1700_v21, %v3530_v57  ;;  %v3026_v21 = vpack.c.bf16 %v1950_v20, %v1949_v19 }
 0xe95   :  { %3120 = vtanh.f32 %v1702_v23  ;;  %v2552_v25 = vmul.f32 -1.442695, %v1702_v23  ;;  %v3618_v23 = vshrl.u32 %v1933_v18, 7 }
 0xe97   :  { %3122 = vpow2.f32 %v2552_v25 }
 0xe9f   :  { %v3121_v24 = vpop.eup %3120 }
 0xea0   :  { %1715 = vrot.lane.b32.xlu0 %v3121_v24, %s3212_s28  ;;  %v1935_v24 = vsub.s32 %v1932_v22, %v3618_v23 }
 0xea1   :  { %v3123_v27 = vpop.eup %3122 }
 0xea2   :  { %v1706_v28 = vadd.f32 1.0, %v3123_v27 }
 0xea4   :  { %3124 = vrcp.f32 %v1706_v28 }
 0xeae   :  { %v3125_v29 = vpop.eup %3124 }
 0xeaf   :  { %v1713_v33 = vmul.f32 %v3125_v29, %v1711_v32 }
 0xf12   :  { %v1716_v30 = vpop.permute.xlu0 %1715 }
 0xf13   :  { %v1718_v31 = vmul.f32 %v3125_v29, %v1716_v30  ;;  %v2345_v30 = vld [vmem:[%s3783_s14 + $0x8] sm:$0xff] }
 0xf15   :  { %1720 = vrot.lane.b32.xlu1 %v1718_v31, %s3213_s9 }
 0xf87   :  { %v1721_v34 = vpop.permute.xlu1 %1720 }
 0xf88   :  { %v1723_v35 = vadd.f32 %v1721_v34, %v1713_v33  ;;  %v1925_v34 = vld [vmem:[%s3800_s27] sm:$0x1] }
 0xf8a   :  { %3126 = vtanh.f32 %v1723_v35  ;;  %v1818_v58 = vrot.slane %v1723_v35, 7  ;;  %v2025_v35 = vld [vmem:[%s3781_s12 + $0x10] sm:$0xff] }
 0xf94   :  { %v3127_v37 = vpop.eup %3126 }
 0xf95   :  { %1726 = vrot.lane.b32.xlu0 %v3127_v37, %s3212_s28  ;;  %v2026_v37 = vld [vmem:[%s3781_s12 + $0x18] sm:$0xff] }
0x1007   :  { %v1727_v26 = vpop.permute.xlu0 %1726 }
0x1008   :  { %v1729_v39 = vmul.f32 %v3125_v29, %v1727_v26  ;;  %v2344_v29 = vld [vmem:[%s3783_s14] sm:$0xff] }
0x1009   :  { %v3053_v31 = vpack.c.bf16 %v2345_v30, %v2344_v29 }
0x100a   :  { %v1731_v40 = vrot.slane %v1729_v39, 4 }
0x100c   :  { %1732 = vrot.lane.b32.xlu1 %v1731_v40, %s3213_s9  ;;  %v3029_v40 = vpack.c.bf16 %v2026_v37, %v2025_v35 }
0x107e   :  { %v1733_v41 = vpop.permute.xlu1 %1732 }
0x107f   :  { %2838 = vmatmul.mubr.msk.f32.vlgmr.msra.gmra.mrb[10].mxu1 %vm332_vm5, %v1733_v41 }
0x1080   :  { %2855 = vmatprep.mubr.msk.f32.mxu1 %vm3210_vm6, %v3211_v56  ;;  %3027 = vmatpush3.bf16.msra.mxu1 %v3026_v21 }
0x1081   :  { %3028 = vmatprep.subr.bf16.mxu1 %v3209_v52 }
0x1152   :  { %v1802_v42 = vpop.f32.mrb[10].mxu1 }
0x1153   :  { %v1807_v43 = vrot.slane %v1802_v42, 3  ;;  %v2839_v45 = vpop.f32.mrb[11].mxu1  ;;  %v2027_v42 = vld [vmem:[%s3781_s12 + $0x20] sm:$0xff] }
0x1155   :  { %v1809_v46 = vadd.f32 %v1807_v43, %v3530_v57  ;;  %v1837_v57 = vld [vmem:[%s3779_s10] sm:$0xff]  ;;  %v2028_v43 = vld [vmem:[%s3781_s12 + $0x28] sm:$0xff] }
0x1156   :  { %v3020_v2 = vpack.c.bf16 %v1838_v0, %v1837_v57  ;;  %v3032_v45 = vpack.c.bf16 %v2028_v43, %v2027_v42  ;;  %v2260_v57 = vld [vmem:[%s3781_s12 + $0xb8] sm:$0xff] }
0x1157   :  { %3128 = vtanh.f32 %v1809_v46  ;;  %v2554_v48 = vmul.f32 -1.442695, %v1809_v46  ;;  %v2103_v46 = vld [vmem:[%s3781_s12 + $0x30] sm:$0xff] }
0x1158   :  { %3021 = vmatpush3.bf16.msra.mxu0 %v3020_v2 }
0x1159   :  { %3130 = vpow2.f32 %v2554_v48  ;;  %3022 = vmatprep.subr.bf16.mxu0 %v3209_v52 }
0x115c   :  { %3024 = vmatpush3.bf16.msra.mxu0 %v3023_v5  ;;  %v2347_v5 = vld [vmem:[%s3783_s14 + $0x18] sm:$0xff]  ;;  %s3216_s14 = smov 127  }
0x115d   :  { %3052 = vmatprep.subr.bf16.mxu0 %v3209_v52 }
0x1161   :  { %v3129_v47 = vpop.eup %3128 }
0x1162   :  { %1822 = vrot.lane.b32.xlu0 %v3129_v47, %s3212_s28  ;;  %v2104_v47 = vld [vmem:[%s3781_s12 + $0x38] sm:$0xff] }
0x1163   :  { %v3131_v50 = vpop.eup %3130  ;;  %v3035_v48 = vpack.c.bf16 %v2104_v47, %v2103_v46 }
0x1164   :  { %v1813_v51 = vadd.f32 1.0, %v3131_v50  ;;  %v2105_v50 = vld [vmem:[%s3781_s12 + $0x40] sm:$0xff] }
0x1166   :  { %3132 = vrcp.f32 %v1813_v51  ;;  %v2106_v51 = vld [vmem:[%s3781_s12 + $0x48] sm:$0xff] }
0x1170   :  { %v3133_v53 = vpop.eup %3132 }
0x1171   :  { %v1820_v60 = vmul.f32 %v3133_v53, %v1818_v58 }
0x11d4   :  { %v1823_v54 = vpop.permute.xlu0 %1822 }
0x11d5   :  { %v1825_v55 = vmul.f32 %v3133_v53, %v1823_v54  ;;  %v2181_v54 = vld [vmem:[%s3781_s12 + $0x70] sm:$0xff] }
0x11d7   :  { %1827 = vrot.lane.b32.xlu1 %v1825_v55, %s3213_s9  ;;  %v2182_v55 = vld [vmem:[%s3781_s12 + $0x78] sm:$0xff] }
0x11d8   :  { %v3041_v58 = vpack.c.bf16 %v2182_v55, %v2181_v54 }
0x1249   :  { %v1828_v61 = vpop.permute.xlu1 %1827 }
0x124a   :  { %v1830_v63 = vadd.f32 %v1828_v61, %v1820_v60  ;;  %v2184_v60 = vld [vmem:[%s3781_s12 + $0x88] sm:$0xff] }
0x124c   :  { %3134 = vtanh.f32 %v1830_v63  ;;  %v2259_v63 = vld [vmem:[%s3781_s12 + $0xb0] sm:$0xff] }
0x124d   :  { %v3047_v0 = vpack.c.bf16 %v2260_v57, %v2259_v63 }
0x1256   :  { %v3135_v6 = vpop.eup %3134 }
0x1257   :  { %1833 = vrot.lane.b32.xlu0 %v3135_v6, %s3212_s28  ;;  %v2341_v6 = vsel %vm70_vm0, %v3364_v14, 0.0 }
0x12c9   :  { %v1834_v59 = vpop.permute.xlu0 %1833 }
0x12ca   :  { %v1836_v7 = vmul.f32 %v3133_v53, %v1834_v59  ;;  %v3038_v53 = vpack.c.bf16 %v2106_v51, %v2105_v50 }
0x12cc   :  { %v1843_v8 = vrot.slane %v1836_v7, 5 }
0x12ce   :  { %1844 = vrot.lane.b32.xlu1 %v1843_v8, %s3213_s9  ;;  %v2423_v8 = vsub.s32 0, %v3618_v23 }
0x12f2   :  { %2339 = vadd.xlane.f32.xlu1 %v2338_v9 }
0x1340   :  { %v1845_v10 = vpop.permute.xlu1 %1844 }
0x1341   :  { %2849 = vmatmul.mubr.msk.f32.vlgmr.msra.gmra.mrb[18].mxu0 %vm332_vm5, %v1845_v10 }
0x1342   :  { %2910 = vmatprep.mubr.msk.f32.mxu0 %vm3210_vm6, %v3211_v56  ;;  %3054 = vmatpush3.bf16.msra.mxu0 %v3053_v31 }
0x1343   :  { %3055 = vmatprep.subr.bf16.mxu0 %v3209_v52 }
0x137f   :  { %v3629_v32 = vpop.xlane.xlu1 %2339 }
0x1414   :  { %v1914_v11 = vpop.f32.mrb[18].mxu0 }
0x1415   :  { %v1915_v12 = vadd.f32 %v1914_v11, %v1841_v62  ;;  %v2850_v13 = vpop.f32.mrb[19].mxu0 }
0x1417   :  { %v1926_v15 = vmul.f32 0.5, %v1915_v12  ;;  %1921 = vrot.lane.b32.xlu1 %v1915_v12, %s3214_s5  ;;  %1919 = vst.msk [vmem:[#allocation3] sm:$0x1] %vm1918_vm12, %v1915_v12 }
0x1419   :  { %v1927_v3 = vmul.f32 1.442695, %v1926_v15 }
0x141b   :  { %3136 = vpow2.f32 %v1927_v3 }
0x1425   :  { %v3137_v25 = vpop.eup %3136 }
0x1426   :  { %v1936_v27 = vrot.slane %v3137_v25, %v1935_v24 }
0x1428   :  { %v1943_v28 = vrot.slane %v1936_v27, %v1935_v24 }
0x142a   :  { %1944 = vrot.lane.b32.xlu0 %v1943_v28, %s3214_s5 }
0x1449   :  { %2342 = vadd.xlane.f32.xlu0 %v2341_v6 }
0x1489   :  { %v1922_v33 = vpop.permute.xlu1 %1921 }
0x148a   :  { %1924 = vst.msk [vmem:[#allocation5] sm:$0x1] %vm1918_vm12, %v1922_v33 }
0x149c   :  { %v1945_v26 = vpop.permute.xlu0 %1944 }
0x149d   :  { %v1947_v39 = vmul.f32 %v1945_v26, %v1925_v34 }
0x149f   :  { %v1948_v41 = vadd.f32 %v1947_v39, %v1915_v12 }
0x14a1   :  { %2856 = vmatmul.mubr.msk.f32.vlgmr.msra.gmra.mrb[12].mxu1 %vm70_vm0, %v1948_v41 }
0x14a2   :  { %3030 = vmatpush3.bf16.msra.mxu1 %v3029_v40  ;;  %2866 = vmatprep.mubr.msk.f32.mxu1 %vm3210_vm6, %v3211_v56 }
0x14a3   :  { %3031 = vmatprep.subr.bf16.mxu1 %v3209_v52 }
0x14a6   :  { %3033 = vmatpush3.bf16.msra.mxu1 %v3032_v45 }
0x14a7   :  { %3034 = vmatprep.subr.bf16.mxu1 %v3209_v52 }
0x14a9   :  { %2867 = vmatmul.mubr.msk.f32.vlgmr.msra.gmra.mrb[12].mxu1 %vm332_vm5, %v3502_v38  ;;  %v2183_v38 = vld [vmem:[%s3781_s12 + $0x80] sm:$0xff] }
0x14aa   :  { %3036 = vmatpush3.bf16.msra.mxu1 %v3035_v48  ;;  %2877 = vmatprep.mubr.msk.f32.mxu1 %vm3210_vm6, %v3211_v56  ;;  %v3044_v61 = vpack.c.bf16 %v2184_v60, %v2183_v38 }
0x14ab   :  { %3037 = vmatprep.subr.bf16.mxu1 %v3209_v52 }
0x14ae   :  { %3039 = vmatpush3.bf16.msra.mxu1 %v3038_v53 }
0x14af   :  { %3040 = vmatprep.subr.bf16.mxu1 %v3209_v52 }
0x14b1   :  { %2878 = vmatmul.mubr.msk.f32.vlgmr.msra.gmra.mrb[12].mxu1 %vm332_vm5, %v3500_v36  ;;  %v2261_v36 = vld [vmem:[%s3781_s12 + $0xc0] sm:$0xff] }
0x14b2   :  { %3042 = vmatpush3.bf16.msra.mxu1 %v3041_v58  ;;  %2888 = vmatprep.mubr.msk.f32.mxu1 %vm3210_vm6, %v3211_v56  ;;  %v3050_v2 = vpack.c.bf16 %v2262_v1, %v2261_v36 }
0x14b3   :  { %3043 = vmatprep.subr.bf16.mxu1 %v3209_v52 }
0x14b6   :  { %3045 = vmatpush3.bf16.msra.mxu1 %v3044_v61 }
0x14b7   :  { %3046 = vmatprep.subr.bf16.mxu1 %v3209_v52 }
0x14b9   :  { %2889 = vmatmul.mubr.msk.f32.vlgmr.msra.gmra.mrb[12].mxu1 %vm332_vm5, %v3506_v44  ;;  %v3056_v44 = vpack.c.bf16 %v2347_v5, %v2346_v4 }
0x14ba   :  { %3048 = vmatpush3.bf16.msra.mxu1 %v3047_v0  ;;  %2899 = vmatprep.mubr.msk.f32.mxu1 %vm3210_vm6, %v3211_v56 }
0x14bb   :  { %3049 = vmatprep.subr.bf16.mxu1 %v3209_v52  ;;  %3057 = vmatpush3.bf16.msra.mxu0 %v3056_v44  ;;  %v1951_v52 = vld [vmem:[%s3782_s13] sm:$0x1]  ;;  %s3142_s13 = scalar_lea.vmem %s2477_s4, 32 }
0x14bc   :  { %p3144_p2 = scmp.lt.s32.totalorder %s3142_s13, %s3138_s25 }
0x14be   :  { %3051 = vmatpush3.bf16.msra.mxu1 %v3050_v2  ;;  %p3145_p3 = por %p3144_p2, %p3143_p1 }
0x14c0   :  { %p3146_p4 = pnand %p3145_p3, %p3139_p0 }
0x14c1   :  { %2900 = vmatmul.mubr.msk.f32.vlgmr.msra.gmra.mrb[12].mxu1 %vm332_vm5, %v3510_v49 }
0x1594   :  { %v2332_v56 = vpop.f32.mrb[12].mxu1 }
0x1595   :  { %v3058_v49 = vadd.f32 %v2332_v56, %v1951_v52  ;;  %v2901_v59 = vpop.f32.mrb[13].mxu1 }
0x1597   :  { %v2337_v7 = vmax.f32 %v3058_v49, 0.0 }
0x1599   :  { %2911 = vmatmul.mubr.msk.f32.vlgmr.msra.gmra.mrb[20].mxu0 %vm332_vm5, %v2337_v7 }
0x166c   :  { %v2417_v9 = vpop.f32.mrb[20].mxu0 }
0x166d   :  { %v2424_v10 = vrot.slane %v2417_v9, %v2423_v8  ;;  %v2912_v62 = vpop.f32.mrb[21].mxu0 }
0x166f   :  { %2428 = vrot.lane.b32.xlu0 %v2424_v10, %s3216_s14 }
0x1670   :  { %3149 = shalt.err (!%p3146_p4)
}
0x1671   :  { %s3150_s3 = scalar_lea.hbm %s3787_s18, 16 }
0x1672   :  { %p3151_p5 = scmp.ne.s32.totalorder %s3787_s18, %s3150_s3  ;;  %p3154_p6 = scmp.lt.u32.totalorder %s3150_s3, %s3787_s18 }
0x1674   :  { %p3156_p7 = pnand %p3154_p6, %p3151_p5 }
0x1676   :  { %3159 = shalt.err (!%p3156_p7)
}
0x1677   :  { %2479 = dma.vmem_to_hbm [thread:$0]  %s2477_s4, 16, %s3787_s18, [#allocation6]  }
0x1678   :  { %s3160_s29 = scalar_lea.vmem %s2467_s11, 16  ;;  %s3164_s6 = scalar_lea.vmem %s2467_s11, 32 }
0x1679   :  { %p3161_p8 = scmp.ne.s32.totalorder %s2467_s11, %s3160_s29  ;;  %p3165_p9 = scmp.lt.s32.totalorder %s2467_s11, %s2467_s11 }
0x167a   :  { %p3166_p10 = scmp.lt.s32.totalorder %s3164_s6, %s3160_s29 }
0x167c   :  { %p3167_p11 = por %p3166_p10, %p3165_p9 }
0x167e   :  { %p3168_p12 = pnand %p3167_p11, %p3161_p8 }
0x1680   :  { %3171 = shalt.err (!%p3168_p12)
}
0x1681   :  { %s3172_s20 = scalar_lea.hbm %s3786_s17, 16 }
0x1682   :  { %p3173_p13 = scmp.ne.s32.totalorder %s3786_s17, %s3172_s20  ;;  %p3176_p0 = scmp.lt.u32.totalorder %s3172_s20, %s3786_s17 }
0x1684   :  { %p3178_p1 = pnand %p3176_p0, %p3173_p13 }
0x1686   :  { %3181 = shalt.err (!%p3178_p1)
}
0x1687   :  { %2469 = dma.vmem_to_hbm [thread:$0]  %s2467_s11, 16, %s3786_s17, [#allocation4]   ;;  %v2343_v14 = vpop.xlane.xlu0 %2342 }
0x1688   :  { %s3219_s5 = smov [#allocation7]  }
0x1689   :  { %s2486_s14 = sshll.u32 %s3219_s5, 4  ;;  %s2487_s14 = int_to_ptr.vmem [resolvable:$true] %s2486_s14 }
0x168a   :  { %s3182_s23 = scalar_lea.vmem %s2487_s14, 128  ;;  %p3187_p3 = scmp.lt.s32.totalorder %s2487_s14, %s2487_s14 }
0x168b   :  { %p3183_p2 = scmp.ne.s32.totalorder %s2487_s14, %s3182_s23  ;;  %p3188_p4 = scmp.lt.s32.totalorder %s3182_s23, %s3182_s23 }
0x168d   :  { %p3189_p5 = por %p3188_p4, %p3187_p3 }
0x168f   :  { %p3190_p6 = pnand %p3189_p5, %p3183_p2 }
0x1691   :  { %3193 = shalt.err (!%p3190_p6)
}
0x1692   :  { %s3194_s25 = scalar_lea.hbm %s3788_s19, 128 }
0x1693   :  { %p3195_p7 = scmp.ne.s32.totalorder %s3788_s19, %s3194_s25  ;;  %p3198_p8 = scmp.lt.u32.totalorder %s3194_s25, %s3788_s19 }
0x1695   :  { %p3200_p9 = pnand %p3198_p8, %p3195_p7 }
0x1697   :  { %3203 = shalt.err (!%p3200_p9)
}
0x1698   :  { %2489 = dma.vmem_to_hbm [thread:$0]  %s2487_s14, 128, %s3788_s19, [#allocation6]   ;;  %v2426_v11 = vmul.f32 %v2424_v10, %v2343_v14  ;;  %v2425_v12 = vmul.f32 %v2424_v10, %v3629_v32  ;;  %v2562_v13 = vld [vmem:[#allocation2] ss:$0 sm:$0xff]  ;;  %vm2452_vm13 = vcmask 15360   ;;  %vm2455_vm14 = vcmask 23552  }
0x1699   :  { %s3220_s26 = smov 2   ;;  %s3801_s28 = sld [smem:[#allocation12_spill]] }
0x169f   :  { %v2443_v19 = vld [vmem:[%s3801_s28 + $0x8] sm:$0xff]  ;;  %v2442_v20 = vld [vmem:[%s3801_s28] sm:$0xff] }
0x16e1   :  { %v2429_v15 = vpop.permute.xlu0 %2428 }
0x16e2   :  { %v2431_v3 = vadd.f32 %v2429_v15, %v2425_v12  ;;  %v2432_v16 = vadd.f32 %v2429_v15, %v2426_v11 }
0x16e4   :  { %v2440_v17 = vadd.f32 %v2562_v13, %v2431_v3  ;;  %v2441_v18 = vadd.f32 %v2562_v13, %v2432_v16 }
0x16e6   :  { %2448 = vrot.lane.b32.xlu0 %v2441_v18, %s3220_s26  ;;  %2446 = vrot.lane.b32.xlu1 %v2440_v17, %s3220_s26 }
0x1758   :  { %v2449_v21 = vpop.permute.xlu0 %2448  ;;  %v2447_v22 = vpop.permute.xlu1 %2446 }
0x1759   :  { %v2454_v23 = vsel %vm2452_vm13, %v2443_v19, %v2449_v21  ;;  %v2453_v24 = vsel %vm2452_vm13, %v2442_v20, %v2447_v22 }
0x175a   :  { %2457 = vst.msk [vmem:[%s3785_s16 + $0x8] sm:$0xff] %vm2455_vm14, %v2454_v23  ;;  %2456 = vst.msk [vmem:[%s3785_s16] sm:$0xff] %vm2455_vm14, %v2453_v24 }
0x175b   :  { %3204 = dma.done.wait [#allocation4], 16  }
0x175c   :  { %3205 = vsyncadd [#allocation4], 4294967280 }
0x175d   :  { %3206 = dma.done.wait [#allocation6], 144  }
0x175e   :  { %3207 = vsyncadd [#allocation6], 4294967152 }
0x175f   :  { %2501 = vsyncpa [#allocation4], 1 }
0x1760   :  { %2502 = vsyncpa [#allocation6], 1 }

</bundles_post_ra>
